<compile_context>
chip_gen: v5e
topology: v5e:2x2
jax: 0.10.0
libtpu: 0.0.40
codegen_flags: <defaults>
</compile_context>

<pallas_src>
import jax
import jax.numpy as jnp
from jax import lax
from jax.experimental import pallas as pl
from jax.experimental.pallas import tpu as pltpu

HIDDEN = 100        # logical hidden size (PyTorch module)
HIDDEN_PAD = 128    # lane-aligned padded hidden size
FC_DIM = 20         # logical nn.Linear(2*hidden, 20)
FC_PAD = 128        # lane-aligned padded FC width
LANE = 128
LN_EPS = 1e-5
NEG_BIG = -1e30     # fill for padded logit lanes (exp underflows to exactly 0)


def _round_up(x, m):
    return -(-x // m) * m


def _sigmoid(x):
    # single EUP tanh push instead of exp + reciprocal; matters on v5e's lone EUP
    return 0.5 * (1.0 + jnp.tanh(0.5 * x))


# ----------------------------- Pallas kernel ---------------------------------
def text_classifier_kernel(emb_ref,
                           wih_f_ref, whh_f_ref, bx_f_ref, bhn_f_ref,
                           wih_b_ref, bx_b_ref, bhn_b_ref,
                           ln_g_ref, ln_b_ref,
                           wfc_ref, bfc_ref, wdec_ref, bdec_ref,
                           out_ref):
    T, BB, E = emb_ref.shape
    HP = HIDDEN_PAD

    # (T, BB, E) -> (T*BB, E): leading-dim collapse (BB % 8 == 0 -> layout preserving),
    # then cast once to bf16 for all MXU consumers.
    emb2d = emb_ref[...].reshape(T * BB, E).astype(jnp.bfloat16)

    # --- all forward-direction input projections in ONE MXU pass (off the h-chain) ---
    # bx_f already contains b_ih (all gates) + b_hh (r,z gates); padded lanes are zero.
    xproj = (jnp.dot(emb2d, wih_f_ref[...], preferred_element_type=jnp.float32)
             + bx_f_ref[...])                                   # (T*BB, 3*HP) f32

    whh = whh_f_ref[...]                                        # (HP, 3*HP) bf16, fused gates
    bhn_f = jnp.broadcast_to(bhn_f_ref[...], (BB, HP))          # hoisted broadcast

    # --- serial recurrence: one fused recurrent matmul per step, fully unrolled ---
    # TODO(synk): for large/dynamic T switch to lax.fori_loop(unroll=k) and consider holding whh
    # resident in the MXU across steps via pltpu.matmul_push_rhs/acc_lhs/pop.
    h = jnp.zeros((BB, HP), jnp.float32)
    for t in range(T):                                          # T static & small -> unrolled
        xp = xproj[t * BB:(t + 1) * BB, :]
        hp = jnp.dot(h.astype(jnp.bfloat16), whh, preferred_element_type=jnp.float32)
        r = _sigmoid(xp[:, 0:HP] + hp[:, 0:HP])
        z = _sigmoid(xp[:, HP:2 * HP] + hp[:, HP:2 * HP])
        n = jnp.tanh(xp[:, 2 * HP:3 * HP] + r * (hp[:, 2 * HP:3 * HP] + bhn_f))
        h = (1.0 - z) * n + z * h
    h_fwd = h

    # --- backward direction at t = T-1 == one reverse GRU step from a zero state ---
    xb = (jnp.dot(emb2d[(T - 1) * BB:T * BB, :], wih_b_ref[...],
                  preferred_element_type=jnp.float32) + bx_b_ref[...])
    r_b = _sigmoid(xb[:, 0:HP])
    z_b = _sigmoid(xb[:, HP:2 * HP])
    n_b = jnp.tanh(xb[:, 2 * HP:3 * HP] + r_b * bhn_b_ref[...])
    h_bwd = (1.0 - z_b) * n_b                                   # + z_b * 0

    # --- LayerNorm over the 2*HIDDEN real features (padded lanes are exactly zero) ---
    x = jnp.concatenate([h_fwd, h_bwd], axis=1)                 # (BB, 2*HP), 128-aligned halves
    inv_n = 1.0 / float(2 * HIDDEN)
    mean = jnp.sum(x, axis=1, keepdims=True) * inv_n
    ex2 = jnp.sum(x * x, axis=1, keepdims=True) * inv_n
    var = jnp.maximum(ex2 - mean * mean, 0.0)                   # biased variance (PyTorch LN)
    xhat = (x - mean) * lax.rsqrt(var + LN_EPS)
    x = xhat * ln_g_ref[...] + ln_b_ref[...]                    # padded gamma/beta = 0

    # Dropout(0.3): eval mode -> identity.
    # TODO(synk): training-mode stochastic dropout would use pltpu.prng_seed/prng_random_bits.

    # --- FC + ReLU -> decoder -> softmax (lane-dense padded class dim) ---
    y = jnp.maximum(
        jnp.dot(x.astype(jnp.bfloat16), wfc_ref[...], preferred_element_type=jnp.float32)
        + bfc_ref[...], 0.0)
    logits = (jnp.dot(y.astype(jnp.bfloat16), wdec_ref[...], preferred_element_type=jnp.float32)
              + bdec_ref[...])                                   # padded lanes = -1e30

    logits = logits - jnp.max(logits, axis=1, keepdims=True)
    e = jnp.exp(logits)                                          # padded lanes -> exactly 0
    out_ref[...] = e * pl.reciprocal(jnp.sum(e, axis=1, keepdims=True), approx=True)


# --------------------- weight fusion / padding (one-time glue) -----------------
def _prepare_kernel_params(params):
    H, HP = HIDDEN, HIDDEN_PAD
    E = params["wih_f"].shape[1]
    C = params["wdec"].shape[1]
    CP = _round_up(C, LANE)                                      # lane-dense output width

    def pad_ih(w):            # (3, E, H) -> (E, 3*HP), gate-fused, lane padded
        out = jnp.zeros((E, 3 * HP), jnp.float32)
        for g in range(3):
            out = out.at[:, g * HP:g * HP + H].set(w[g])
        return out

    def pad_hh(w):            # (3, H, H) -> (HP, 3*HP)
        out = jnp.zeros((HP, 3 * HP), jnp.float32)
        for g in range(3):
            out = out.at[:H, g * HP:g * HP + H].set(w[g])
        return out

    def pad_b(b):             # (3, 1, H) -> (1, 3*HP)
        out = jnp.zeros((1, 3 * HP), jnp.float32)
        for g in range(3):
            out = out.at[:, g * HP:g * HP + H].set(b[g])
        return out

    bih_f, bhh_f = pad_b(params["bih_f"]), pad_b(params["bhh_f"])
    bih_b, bhh_b = pad_b(params["bih_b"]), pad_b(params["bhh_b"])

    # Fold b_ih (all gates) + b_hh (r, z gates) into the precomputed input projection.
    # The n-gate recurrent bias must stay inside r * (...) per PyTorch GRU semantics.
    bx_f = bih_f + bhh_f.at[:, 2 * HP:].set(0.0)
    bx_b = bih_b + bhh_b.at[:, 2 * HP:].set(0.0)
    bhn_f = bhh_f[:, 2 * HP:3 * HP]
    bhn_b = bhh_b[:, 2 * HP:3 * HP]

    def pad_ln(v):            # (1, 2H) -> (1, 2*HP), halves mapped to 128-aligned slots
        out = jnp.zeros((1, 2 * HP), jnp.float32)
        out = out.at[:, :H].set(v[:, :H])
        out = out.at[:, HP:HP + H].set(v[:, H:2 * H])
        return out

    wfc = jnp.zeros((2 * HP, FC_PAD), jnp.float32)
    wfc = wfc.at[:H, :FC_DIM].set(params["wfc"][:H])
    wfc = wfc.at[HP:HP + H, :FC_DIM].set(params["wfc"][H:2 * H])
    bfc = jnp.zeros((1, FC_PAD), jnp.float32).at[:, :FC_DIM].set(params["bfc"])
    wdec = jnp.zeros((FC_PAD, CP), jnp.float32).at[:FC_DIM, :C].set(params["wdec"])
    # padded logit lanes get a huge negative bias so softmax mass can't leak into them
    bdec = jnp.full((1, CP), NEG_BIG, jnp.float32).at[:, :C].set(params["bdec"])

    bf = lambda a: a.astype(jnp.bfloat16)      # MXU-native dtype on v5e/v6e/v7x
    return dict(
        wih_f=bf(pad_ih(params["wih_f"])), whh_f=bf(pad_hh(params["whh_f"])),
        bx_f=bx_f, bhn_f=bhn_f,
        wih_b=bf(pad_ih(params["wih_b"])), bx_b=bx_b, bhn_b=bhn_b,
        ln_g=pad_ln(params["ln_g"]), ln_b=pad_ln(params["ln_b"]),
        wfc=bf(wfc), bfc=bfc, wdec=bf(wdec), bdec=bdec,
    )


# ------------------------------ wrapper ---------------------------------------
def text_classifier_forward(text, params):
    """text: int32 (T, B) token ids. Returns (B, num_class) softmax probabilities."""
    kp = _prepare_kernel_params(params)
    # TODO(synk): fuse the embedding gather into the kernel via PrefetchScalarGridSpec +
    # pl.Element row gather to avoid materializing (T, B, E) in HBM; small win at E=32.
    emb = params["embed_w"][text].astype(jnp.float32)           # (T, B, E) gather = glue
    T, B, E = emb.shape
    C = params["wdec"].shape[1]
    CP = kp["wdec"].shape[1]

    # Batch block: big enough to fill the MXU (up to 256 rows), but aim for nb >= 2 on large
    # batches so v7x's two TensorCores both get work via the "parallel" grid axis.
    BB = min(256, max(8, _round_up(-(-B // 2), 8)))
    B_pad = _round_up(B, BB)
    nb = B_pad // BB
    if B_pad != B:
        emb = jnp.zeros((T, B_pad, E), jnp.float32).at[:, :B, :].set(emb)
    # TODO(synk): for long sequences tile emb over T with a second grid axis / emit_pipeline so
    # the whole (T, BB, E) block + xproj never has to fit VMEM (64 MiB on v7x); trivial at T=8.

    args = (emb,
            kp["wih_f"], kp["whh_f"], kp["bx_f"], kp["bhn_f"],
            kp["wih_b"], kp["bx_b"], kp["bhn_b"],
            kp["ln_g"], kp["ln_b"],
            kp["wfc"], kp["bfc"], kp["wdec"], kp["bdec"])

    def full_spec(a):
        n = a.ndim
        return pl.BlockSpec(a.shape, lambda b: (0,) * n)

    in_specs = ([pl.BlockSpec((T, BB, E), lambda b: (0, b, 0))]
                + [full_spec(a) for a in args[1:]])

    # VMEM budget: double-buffered emb block + xproj slab + activations + weights + headroom,
    # clamped below v7x's 64 MiB physical VMEM.
    weight_bytes = sum(int(a.size) * a.dtype.itemsize for a in args[1:])
    vmem_bytes = (2 * T * BB * E * 4
                  + T * BB * 3 * HIDDEN_PAD * 4
                  + 8 * BB * (2 * HIDDEN_PAD + CP) * 4
                  + 2 * weight_bytes
                  + 2 * BB * CP * 4
                  + (8 << 20))
    vmem_limit = int(min(max(vmem_bytes, 32 << 20), 56 << 20))

    out = pl.pallas_call(
        text_classifier_kernel,
        out_shape=jax.ShapeDtypeStruct((B_pad, CP), jnp.float32),
        grid=(nb,),
        in_specs=in_specs,
        out_specs=pl.BlockSpec((BB, CP), lambda b: (b, 0)),
        compiler_params=pltpu.CompilerParams(
            dimension_semantics=("parallel",),    # batch blocks shard across TCs (v7x)
            vmem_limit_bytes=vmem_limit),
    )(*args)
    return out[:B, :C]


# ---------------------------- parameter init ----------------------------------
def init_params(key, vocab_size, embed_dim, num_class):
    ks = jax.random.split(key, 16)
    kh = 1.0 / float(jnp.sqrt(HIDDEN))
    kfc = 1.0 / float(jnp.sqrt(2 * HIDDEN))
    kdec = 1.0 / float(jnp.sqrt(FC_DIM))
    u = lambda k_, shape, b: jax.random.uniform(k_, shape, jnp.float32, -b, b)
    return dict(
        embed_w=jax.random.normal(ks[0], (vocab_size, embed_dim), jnp.float32),
        # GRU weights stored pre-transposed per gate: (3, in, H) so kernels do x @ W
        wih_f=u(ks[1], (3, embed_dim, HIDDEN), kh),
        whh_f=u(ks[2], (3, HIDDEN, HIDDEN), kh),
        bih_f=u(ks[3], (3, 1, HIDDEN), kh),
        bhh_f=u(ks[4], (3, 1, HIDDEN), kh),
        wih_b=u(ks[5], (3, embed_dim, HIDDEN), kh),
        whh_b=u(ks[6], (3, HIDDEN, HIDDEN), kh),
        bih_b=u(ks[7], (3, 1, HIDDEN), kh),
        bhh_b=u(ks[8], (3, 1, HIDDEN), kh),
        ln_g=jnp.ones((1, 2 * HIDDEN), jnp.float32),
        ln_b=jnp.zeros((1, 2 * HIDDEN), jnp.float32),
        wfc=u(ks[9], (2 * HIDDEN, FC_DIM), kfc),
        bfc=u(ks[10], (1, FC_DIM), kfc),
        wdec=u(ks[11], (FC_DIM, num_class), kdec),
        bdec=u(ks[12], (1, num_class), kdec),
    )


# --------------------------- pure-JAX reference --------------------------------
def reference_forward(text, params):
    emb = params["embed_w"][text].astype(jnp.float32)
    T, B, _ = emb.shape
    H = HIDDEN

    def step(x_t, h, wih, whh, bih, bhh):
        r = jax.nn.sigmoid(x_t @ wih[0] + bih[0] + h @ whh[0] + bhh[0])
        z = jax.nn.sigmoid(x_t @ wih[1] + bih[1] + h @ whh[1] + bhh[1])
        n = jnp.tanh(x_t @ wih[2] + bih[2] + r * (h @ whh[2] + bhh[2]))
        return (1.0 - z) * n + z * h

    h = jnp.zeros((B, H), jnp.float32)
    for t in range(T):
        h = step(emb[t], h, params["wih_f"], params["whh_f"], params["bih_f"], params["bhh_f"])
    h_fwd = h

    # full reverse sweep, take the output at timestep T-1 (mirrors PyTorch gru_out[-1])
    h = jnp.zeros((B, H), jnp.float32)
    outs_b = [None] * T
    for t in range(T - 1, -1, -1):
        h = step(emb[t], h, params["wih_b"], params["whh_b"], params["bih_b"], params["bhh_b"])
        outs_b[t] = h
    h_bwd = outs_b[T - 1]

    x = jnp.concatenate([h_fwd, h_bwd], axis=1)
    mean = jnp.mean(x, axis=1, keepdims=True)
    var = jnp.mean((x - mean) ** 2, axis=1, keepdims=True)
    x = (x - mean) / jnp.sqrt(var + LN_EPS) * params["ln_g"] + params["ln_b"]
    y = jnp.maximum(x @ params["wfc"] + params["bfc"], 0.0)
    logits = y @ params["wdec"] + params["bdec"]
    return jax.nn.softmax(logits, axis=1)


# ---------------------------------- main ---------------------------------------
if __name__ == "__main__":
    VOCAB, EMBED_DIM, NUM_CLASS = 50, 32, 4
    T, B = 8, 2

    key = jax.random.PRNGKey(0)
    k_params, k_text = jax.random.split(key)
    params = init_params(k_params, VOCAB, EMBED_DIM, NUM_CLASS)
    text = jax.random.randint(k_text, (T, B), 0, VOCAB, dtype=jnp.int32)

    out = text_classifier_forward(text, params)
    out = jax.block_until_ready(out)

    ref = reference_forward(text, params)
    assert out.shape == (B, NUM_CLASS)
    # tolerance covers bf16 matmul operands (f32 accumulate) + approx-reciprocal softmax denom
    assert jnp.allclose(out, ref, atol=3e-2, rtol=3e-2), "kernel/reference mismatch"
    assert jnp.allclose(jnp.sum(out, axis=1), 1.0, atol=2e-3), "softmax rows must sum to ~1"

    print("KERNEL_OK")
</pallas_src>

<mosaic_0001>
module attributes {stable_mosaic.version = 11 : i64} {
  func.func @text_classifier_kernel(%arg0: i32, %arg1: memref<8x8x32xf32, #tpu.memory_space<vmem>>, %arg2: memref<32x384xbf16, #tpu.memory_space<vmem>>, %arg3: memref<128x384xbf16, #tpu.memory_space<vmem>>, %arg4: memref<1x384xf32, #tpu.memory_space<vmem>>, %arg5: memref<1x128xf32, #tpu.memory_space<vmem>>, %arg6: memref<32x384xbf16, #tpu.memory_space<vmem>>, %arg7: memref<1x384xf32, #tpu.memory_space<vmem>>, %arg8: memref<1x128xf32, #tpu.memory_space<vmem>>, %arg9: memref<1x256xf32, #tpu.memory_space<vmem>>, %arg10: memref<1x256xf32, #tpu.memory_space<vmem>>, %arg11: memref<256x128xbf16, #tpu.memory_space<vmem>>, %arg12: memref<1x128xf32, #tpu.memory_space<vmem>>, %arg13: memref<128x128xbf16, #tpu.memory_space<vmem>>, %arg14: memref<1x128xf32, #tpu.memory_space<vmem>>, %arg15: memref<8x128xf32, #tpu.memory_space<vmem>>) attributes {dimension_semantics = [#tpu.dimension_semantics<parallel>], iteration_bounds = array<i64: 1>, scalar_prefetch = 0 : i64, scratch_operands = 0 : i64, tpu.core_type = #tpu.core_type<tc>, window_params = [{transform_indices = @transform_0, window_bounds = array<i64: 8, 8, 32>}, {pipeline_mode = #tpu.pipeline_mode<synchronous>, transform_indices = @transform_1, window_bounds = array<i64: 32, 384>}, {pipeline_mode = #tpu.pipeline_mode<synchronous>, transform_indices = @transform_2, window_bounds = array<i64: 128, 384>}, {pipeline_mode = #tpu.pipeline_mode<synchronous>, transform_indices = @transform_3, window_bounds = array<i64: 1, 384>}, {pipeline_mode = #tpu.pipeline_mode<synchronous>, transform_indices = @transform_4, window_bounds = array<i64: 1, 128>}, {pipeline_mode = #tpu.pipeline_mode<synchronous>, transform_indices = @transform_5, window_bounds = array<i64: 32, 384>}, {pipeline_mode = #tpu.pipeline_mode<synchronous>, transform_indices = @transform_6, window_bounds = array<i64: 1, 384>}, {pipeline_mode = #tpu.pipeline_mode<synchronous>, transform_indices = @transform_7, window_bounds = array<i64: 1, 128>}, {pipeline_mode = #tpu.pipeline_mode<synchronous>, transform_indices = @transform_8, window_bounds = array<i64: 1, 256>}, {pipeline_mode = #tpu.pipeline_mode<synchronous>, transform_indices = @transform_9, window_bounds = array<i64: 1, 256>}, {pipeline_mode = #tpu.pipeline_mode<synchronous>, transform_indices = @transform_10, window_bounds = array<i64: 256, 128>}, {pipeline_mode = #tpu.pipeline_mode<synchronous>, transform_indices = @transform_11, window_bounds = array<i64: 1, 128>}, {pipeline_mode = #tpu.pipeline_mode<synchronous>, transform_indices = @transform_12, window_bounds = array<i64: 128, 128>}, {pipeline_mode = #tpu.pipeline_mode<synchronous>, transform_indices = @transform_13, window_bounds = array<i64: 1, 128>}, {transform_indices = @transform_14, window_bounds = array<i64: 8, 128>}]} {
    %c0 = arith.constant 0 : index
    %c0_0 = arith.constant 0 : index
    %c0_1 = arith.constant 0 : index
    %0 = vector.load %arg1[%c0, %c0_0, %c0_1] : memref<8x8x32xf32, #tpu.memory_space<vmem>>, vector<8x8x32xf32>
    %1 = vector.shape_cast %0 : vector<8x8x32xf32> to vector<64x32xf32>
    %2 = arith.truncf %1 : vector<64x32xf32> to vector<64x32xbf16>
    %c0_2 = arith.constant 0 : index
    %c0_3 = arith.constant 0 : index
    %3 = vector.load %arg2[%c0_2, %c0_3] : memref<32x384xbf16, #tpu.memory_space<vmem>>, vector<32x384xbf16>
    %cst = arith.constant dense<0.000000e+00> : vector<64x384xf32>
    %4 = tpu.matmul %2, %3, %cst {dimension_numbers = #tpu.dot_dimension_numbers<[1], [0], [0], [1], [0, 0, 1, 1], [], []>} : vector<64x32xbf16>, vector<32x384xbf16>, vector<64x384xf32> -> vector<64x384xf32>
    %c0_4 = arith.constant 0 : index
    %c0_5 = arith.constant 0 : index
    %5 = vector.load %arg4[%c0_4, %c0_5] : memref<1x384xf32, #tpu.memory_space<vmem>>, vector<1x384xf32>
    %6 = vector.broadcast %5 : vector<1x384xf32> to vector<64x384xf32>
    %7 = arith.addf %4, %6 : vector<64x384xf32>
    %c0_6 = arith.constant 0 : index
    %c0_7 = arith.constant 0 : index
    %8 = vector.load %arg3[%c0_6, %c0_7] : memref<128x384xbf16, #tpu.memory_space<vmem>>, vector<128x384xbf16>
    %c0_8 = arith.constant 0 : index
    %c0_9 = arith.constant 0 : index
    %9 = vector.load %arg5[%c0_8, %c0_9] : memref<1x128xf32, #tpu.memory_space<vmem>>, vector<1x128xf32>
    %10 = vector.shape_cast %9 : vector<1x128xf32> to vector<1x128xf32>
    %11 = vector.broadcast %10 : vector<1x128xf32> to vector<8x128xf32>
    %cst_10 = arith.constant 0.000000e+00 : f32
    %12 = vector.broadcast %cst_10 : f32 to vector<8x128xf32>
    %13 = vector.extract_strided_slice %7 {offsets = [0, 0], sizes = [8, 384], strides = [1, 1]} : vector<64x384xf32> to vector<8x384xf32>
    %14 = arith.truncf %12 : vector<8x128xf32> to vector<8x128xbf16>
    %cst_11 = arith.constant dense<0.000000e+00> : vector<8x384xf32>
    %15 = tpu.matmul %14, %8, %cst_11 {dimension_numbers = #tpu.dot_dimension_numbers<[1], [0], [0], [1], [0, 0, 1, 1], [], []>} : vector<8x128xbf16>, vector<128x384xbf16>, vector<8x384xf32> -> vector<8x384xf32>
    %16 = vector.extract_strided_slice %13 {offsets = [0, 0], sizes = [8, 128], strides = [1, 1]} : vector<8x384xf32> to vector<8x128xf32>
    %17 = vector.extract_strided_slice %15 {offsets = [0, 0], sizes = [8, 128], strides = [1, 1]} : vector<8x384xf32> to vector<8x128xf32>
    %18 = arith.addf %16, %17 : vector<8x128xf32>
    %cst_12 = arith.constant 5.000000e-01 : f32
    %19 = vector.broadcast %cst_12 : f32 to vector<8x128xf32>
    %20 = arith.mulf %19, %18 : vector<8x128xf32>
    %21 = math.tanh %20 : vector<8x128xf32>
    %cst_13 = arith.constant 1.000000e+00 : f32
    %22 = vector.broadcast %cst_13 : f32 to vector<8x128xf32>
    %23 = arith.addf %22, %21 : vector<8x128xf32>
    %cst_14 = arith.constant 5.000000e-01 : f32
    %24 = vector.broadcast %cst_14 : f32 to vector<8x128xf32>
    %25 = arith.mulf %24, %23 : vector<8x128xf32>
    %26 = vector.extract_strided_slice %13 {offsets = [0, 128], sizes = [8, 128], strides = [1, 1]} : vector<8x384xf32> to vector<8x128xf32>
    %27 = vector.extract_strided_slice %15 {offsets = [0, 128], sizes = [8, 128], strides = [1, 1]} : vector<8x384xf32> to vector<8x128xf32>
    %28 = arith.addf %26, %27 : vector<8x128xf32>
    %cst_15 = arith.constant 5.000000e-01 : f32
    %29 = vector.broadcast %cst_15 : f32 to vector<8x128xf32>
    %30 = arith.mulf %29, %28 : vector<8x128xf32>
    %31 = math.tanh %30 : vector<8x128xf32>
    %cst_16 = arith.constant 1.000000e+00 : f32
    %32 = vector.broadcast %cst_16 : f32 to vector<8x128xf32>
    %33 = arith.addf %32, %31 : vector<8x128xf32>
    %cst_17 = arith.constant 5.000000e-01 : f32
    %34 = vector.broadcast %cst_17 : f32 to vector<8x128xf32>
    %35 = arith.mulf %34, %33 : vector<8x128xf32>
    %36 = vector.extract_strided_slice %13 {offsets = [0, 256], sizes = [8, 128], strides = [1, 1]} : vector<8x384xf32> to vector<8x128xf32>
    %37 = vector.extract_strided_slice %15 {offsets = [0, 256], sizes = [8, 128], strides = [1, 1]} : vector<8x384xf32> to vector<8x128xf32>
    %38 = arith.addf %37, %11 : vector<8x128xf32>
    %39 = arith.mulf %25, %38 : vector<8x128xf32>
    %40 = arith.addf %36, %39 : vector<8x128xf32>
    %41 = math.tanh %40 : vector<8x128xf32>
    %cst_18 = arith.constant 1.000000e+00 : f32
    %42 = vector.broadcast %cst_18 : f32 to vector<8x128xf32>
    %43 = arith.subf %42, %35 : vector<8x128xf32>
    %44 = arith.mulf %43, %41 : vector<8x128xf32>
    %45 = arith.mulf %35, %12 : vector<8x128xf32>
    %46 = arith.addf %44, %45 : vector<8x128xf32>
    %47 = vector.extract_strided_slice %7 {offsets = [8, 0], sizes = [8, 384], strides = [1, 1]} : vector<64x384xf32> to vector<8x384xf32>
    %48 = arith.truncf %46 : vector<8x128xf32> to vector<8x128xbf16>
    %cst_19 = arith.constant dense<0.000000e+00> : vector<8x384xf32>
    %49 = tpu.matmul %48, %8, %cst_19 {dimension_numbers = #tpu.dot_dimension_numbers<[1], [0], [0], [1], [0, 0, 1, 1], [], []>} : vector<8x128xbf16>, vector<128x384xbf16>, vector<8x384xf32> -> vector<8x384xf32>
    %50 = vector.extract_strided_slice %47 {offsets = [0, 0], sizes = [8, 128], strides = [1, 1]} : vector<8x384xf32> to vector<8x128xf32>
    %51 = vector.extract_strided_slice %49 {offsets = [0, 0], sizes = [8, 128], strides = [1, 1]} : vector<8x384xf32> to vector<8x128xf32>
    %52 = arith.addf %50, %51 : vector<8x128xf32>
    %cst_20 = arith.constant 5.000000e-01 : f32
    %53 = vector.broadcast %cst_20 : f32 to vector<8x128xf32>
    %54 = arith.mulf %53, %52 : vector<8x128xf32>
    %55 = math.tanh %54 : vector<8x128xf32>
    %cst_21 = arith.constant 1.000000e+00 : f32
    %56 = vector.broadcast %cst_21 : f32 to vector<8x128xf32>
    %57 = arith.addf %56, %55 : vector<8x128xf32>
    %cst_22 = arith.constant 5.000000e-01 : f32
    %58 = vector.broadcast %cst_22 : f32 to vector<8x128xf32>
    %59 = arith.mulf %58, %57 : vector<8x128xf32>
    %60 = vector.extract_strided_slice %47 {offsets = [0, 128], sizes = [8, 128], strides = [1, 1]} : vector<8x384xf32> to vector<8x128xf32>
    %61 = vector.extract_strided_slice %49 {offsets = [0, 128], sizes = [8, 128], strides = [1, 1]} : vector<8x384xf32> to vector<8x128xf32>
    %62 = arith.addf %60, %61 : vector<8x128xf32>
    %cst_23 = arith.constant 5.000000e-01 : f32
    %63 = vector.broadcast %cst_23 : f32 to vector<8x128xf32>
    %64 = arith.mulf %63, %62 : vector<8x128xf32>
    %65 = math.tanh %64 : vector<8x128xf32>
    %cst_24 = arith.constant 1.000000e+00 : f32
    %66 = vector.broadcast %cst_24 : f32 to vector<8x128xf32>
    %67 = arith.addf %66, %65 : vector<8x128xf32>
    %cst_25 = arith.constant 5.000000e-01 : f32
    %68 = vector.broadcast %cst_25 : f32 to vector<8x128xf32>
    %69 = arith.mulf %68, %67 : vector<8x128xf32>
    %70 = vector.extract_strided_slice %47 {offsets = [0, 256], sizes = [8, 128], strides = [1, 1]} : vector<8x384xf32> to vector<8x128xf32>
    %71 = vector.extract_strided_slice %49 {offsets = [0, 256], sizes = [8, 128], strides = [1, 1]} : vector<8x384xf32> to vector<8x128xf32>
    %72 = arith.addf %71, %11 : vector<8x128xf32>
    %73 = arith.mulf %59, %72 : vector<8x128xf32>
    %74 = arith.addf %70, %73 : vector<8x128xf32>
    %75 = math.tanh %74 : vector<8x128xf32>
    %cst_26 = arith.constant 1.000000e+00 : f32
    %76 = vector.broadcast %cst_26 : f32 to vector<8x128xf32>
    %77 = arith.subf %76, %69 : vector<8x128xf32>
    %78 = arith.mulf %77, %75 : vector<8x128xf32>
    %79 = arith.mulf %69, %46 : vector<8x128xf32>
    %80 = arith.addf %78, %79 : vector<8x128xf32>
    %81 = vector.extract_strided_slice %7 {offsets = [16, 0], sizes = [8, 384], strides = [1, 1]} : vector<64x384xf32> to vector<8x384xf32>
    %82 = arith.truncf %80 : vector<8x128xf32> to vector<8x128xbf16>
    %cst_27 = arith.constant dense<0.000000e+00> : vector<8x384xf32>
    %83 = tpu.matmul %82, %8, %cst_27 {dimension_numbers = #tpu.dot_dimension_numbers<[1], [0], [0], [1], [0, 0, 1, 1], [], []>} : vector<8x128xbf16>, vector<128x384xbf16>, vector<8x384xf32> -> vector<8x384xf32>
    %84 = vector.extract_strided_slice %81 {offsets = [0, 0], sizes = [8, 128], strides = [1, 1]} : vector<8x384xf32> to vector<8x128xf32>
    %85 = vector.extract_strided_slice %83 {offsets = [0, 0], sizes = [8, 128], strides = [1, 1]} : vector<8x384xf32> to vector<8x128xf32>
    %86 = arith.addf %84, %85 : vector<8x128xf32>
    %cst_28 = arith.constant 5.000000e-01 : f32
    %87 = vector.broadcast %cst_28 : f32 to vector<8x128xf32>
    %88 = arith.mulf %87, %86 : vector<8x128xf32>
    %89 = math.tanh %88 : vector<8x128xf32>
    %cst_29 = arith.constant 1.000000e+00 : f32
    %90 = vector.broadcast %cst_29 : f32 to vector<8x128xf32>
    %91 = arith.addf %90, %89 : vector<8x128xf32>
    %cst_30 = arith.constant 5.000000e-01 : f32
    %92 = vector.broadcast %cst_30 : f32 to vector<8x128xf32>
    %93 = arith.mulf %92, %91 : vector<8x128xf32>
    %94 = vector.extract_strided_slice %81 {offsets = [0, 128], sizes = [8, 128], strides = [1, 1]} : vector<8x384xf32> to vector<8x128xf32>
    %95 = vector.extract_strided_slice %83 {offsets = [0, 128], sizes = [8, 128], strides = [1, 1]} : vector<8x384xf32> to vector<8x128xf32>
    %96 = arith.addf %94, %95 : vector<8x128xf32>
    %cst_31 = arith.constant 5.000000e-01 : f32
    %97 = vector.broadcast %cst_31 : f32 to vector<8x128xf32>
    %98 = arith.mulf %97, %96 : vector<8x128xf32>
    %99 = math.tanh %98 : vector<8x128xf32>
    %cst_32 = arith.constant 1.000000e+00 : f32
    %100 = vector.broadcast %cst_32 : f32 to vector<8x128xf32>
    %101 = arith.addf %100, %99 : vector<8x128xf32>
    %cst_33 = arith.constant 5.000000e-01 : f32
    %102 = vector.broadcast %cst_33 : f32 to vector<8x128xf32>
    %103 = arith.mulf %102, %101 : vector<8x128xf32>
    %104 = vector.extract_strided_slice %81 {offsets = [0, 256], sizes = [8, 128], strides = [1, 1]} : vector<8x384xf32> to vector<8x128xf32>
    %105 = vector.extract_strided_slice %83 {offsets = [0, 256], sizes = [8, 128], strides = [1, 1]} : vector<8x384xf32> to vector<8x128xf32>
    %106 = arith.addf %105, %11 : vector<8x128xf32>
    %107 = arith.mulf %93, %106 : vector<8x128xf32>
    %108 = arith.addf %104, %107 : vector<8x128xf32>
    %109 = math.tanh %108 : vector<8x128xf32>
    %cst_34 = arith.constant 1.000000e+00 : f32
    %110 = vector.broadcast %cst_34 : f32 to vector<8x128xf32>
    %111 = arith.subf %110, %103 : vector<8x128xf32>
    %112 = arith.mulf %111, %109 : vector<8x128xf32>
    %113 = arith.mulf %103, %80 : vector<8x128xf32>
    %114 = arith.addf %112, %113 : vector<8x128xf32>
    %115 = vector.extract_strided_slice %7 {offsets = [24, 0], sizes = [8, 384], strides = [1, 1]} : vector<64x384xf32> to vector<8x384xf32>
    %116 = arith.truncf %114 : vector<8x128xf32> to vector<8x128xbf16>
    %cst_35 = arith.constant dense<0.000000e+00> : vector<8x384xf32>
    %117 = tpu.matmul %116, %8, %cst_35 {dimension_numbers = #tpu.dot_dimension_numbers<[1], [0], [0], [1], [0, 0, 1, 1], [], []>} : vector<8x128xbf16>, vector<128x384xbf16>, vector<8x384xf32> -> vector<8x384xf32>
    %118 = vector.extract_strided_slice %115 {offsets = [0, 0], sizes = [8, 128], strides = [1, 1]} : vector<8x384xf32> to vector<8x128xf32>
    %119 = vector.extract_strided_slice %117 {offsets = [0, 0], sizes = [8, 128], strides = [1, 1]} : vector<8x384xf32> to vector<8x128xf32>
    %120 = arith.addf %118, %119 : vector<8x128xf32>
    %cst_36 = arith.constant 5.000000e-01 : f32
    %121 = vector.broadcast %cst_36 : f32 to vector<8x128xf32>
    %122 = arith.mulf %121, %120 : vector<8x128xf32>
    %123 = math.tanh %122 : vector<8x128xf32>
    %cst_37 = arith.constant 1.000000e+00 : f32
    %124 = vector.broadcast %cst_37 : f32 to vector<8x128xf32>
    %125 = arith.addf %124, %123 : vector<8x128xf32>
    %cst_38 = arith.constant 5.000000e-01 : f32
    %126 = vector.broadcast %cst_38 : f32 to vector<8x128xf32>
    %127 = arith.mulf %126, %125 : vector<8x128xf32>
    %128 = vector.extract_strided_slice %115 {offsets = [0, 128], sizes = [8, 128], strides = [1, 1]} : vector<8x384xf32> to vector<8x128xf32>
    %129 = vector.extract_strided_slice %117 {offsets = [0, 128], sizes = [8, 128], strides = [1, 1]} : vector<8x384xf32> to vector<8x128xf32>
    %130 = arith.addf %128, %129 : vector<8x128xf32>
    %cst_39 = arith.constant 5.000000e-01 : f32
    %131 = vector.broadcast %cst_39 : f32 to vector<8x128xf32>
    %132 = arith.mulf %131, %130 : vector<8x128xf32>
    %133 = math.tanh %132 : vector<8x128xf32>
    %cst_40 = arith.constant 1.000000e+00 : f32
    %134 = vector.broadcast %cst_40 : f32 to vector<8x128xf32>
    %135 = arith.addf %134, %133 : vector<8x128xf32>
    %cst_41 = arith.constant 5.000000e-01 : f32
    %136 = vector.broadcast %cst_41 : f32 to vector<8x128xf32>
    %137 = arith.mulf %136, %135 : vector<8x128xf32>
    %138 = vector.extract_strided_slice %115 {offsets = [0, 256], sizes = [8, 128], strides = [1, 1]} : vector<8x384xf32> to vector<8x128xf32>
    %139 = vector.extract_strided_slice %117 {offsets = [0, 256], sizes = [8, 128], strides = [1, 1]} : vector<8x384xf32> to vector<8x128xf32>
    %140 = arith.addf %139, %11 : vector<8x128xf32>
    %141 = arith.mulf %127, %140 : vector<8x128xf32>
    %142 = arith.addf %138, %141 : vector<8x128xf32>
    %143 = math.tanh %142 : vector<8x128xf32>
    %cst_42 = arith.constant 1.000000e+00 : f32
    %144 = vector.broadcast %cst_42 : f32 to vector<8x128xf32>
    %145 = arith.subf %144, %137 : vector<8x128xf32>
    %146 = arith.mulf %145, %143 : vector<8x128xf32>
    %147 = arith.mulf %137, %114 : vector<8x128xf32>
    %148 = arith.addf %146, %147 : vector<8x128xf32>
    %149 = vector.extract_strided_slice %7 {offsets = [32, 0], sizes = [8, 384], strides = [1, 1]} : vector<64x384xf32> to vector<8x384xf32>
    %150 = arith.truncf %148 : vector<8x128xf32> to vector<8x128xbf16>
    %cst_43 = arith.constant dense<0.000000e+00> : vector<8x384xf32>
    %151 = tpu.matmul %150, %8, %cst_43 {dimension_numbers = #tpu.dot_dimension_numbers<[1], [0], [0], [1], [0, 0, 1, 1], [], []>} : vector<8x128xbf16>, vector<128x384xbf16>, vector<8x384xf32> -> vector<8x384xf32>
    %152 = vector.extract_strided_slice %149 {offsets = [0, 0], sizes = [8, 128], strides = [1, 1]} : vector<8x384xf32> to vector<8x128xf32>
    %153 = vector.extract_strided_slice %151 {offsets = [0, 0], sizes = [8, 128], strides = [1, 1]} : vector<8x384xf32> to vector<8x128xf32>
    %154 = arith.addf %152, %153 : vector<8x128xf32>
    %cst_44 = arith.constant 5.000000e-01 : f32
    %155 = vector.broadcast %cst_44 : f32 to vector<8x128xf32>
    %156 = arith.mulf %155, %154 : vector<8x128xf32>
    %157 = math.tanh %156 : vector<8x128xf32>
    %cst_45 = arith.constant 1.000000e+00 : f32
    %158 = vector.broadcast %cst_45 : f32 to vector<8x128xf32>
    %159 = arith.addf %158, %157 : vector<8x128xf32>
    %cst_46 = arith.constant 5.000000e-01 : f32
    %160 = vector.broadcast %cst_46 : f32 to vector<8x128xf32>
    %161 = arith.mulf %160, %159 : vector<8x128xf32>
    %162 = vector.extract_strided_slice %149 {offsets = [0, 128], sizes = [8, 128], strides = [1, 1]} : vector<8x384xf32> to vector<8x128xf32>
    %163 = vector.extract_strided_slice %151 {offsets = [0, 128], sizes = [8, 128], strides = [1, 1]} : vector<8x384xf32> to vector<8x128xf32>
    %164 = arith.addf %162, %163 : vector<8x128xf32>
    %cst_47 = arith.constant 5.000000e-01 : f32
    %165 = vector.broadcast %cst_47 : f32 to vector<8x128xf32>
    %166 = arith.mulf %165, %164 : vector<8x128xf32>
    %167 = math.tanh %166 : vector<8x128xf32>
    %cst_48 = arith.constant 1.000000e+00 : f32
    %168 = vector.broadcast %cst_48 : f32 to vector<8x128xf32>
    %169 = arith.addf %168, %167 : vector<8x128xf32>
    %cst_49 = arith.constant 5.000000e-01 : f32
    %170 = vector.broadcast %cst_49 : f32 to vector<8x128xf32>
    %171 = arith.mulf %170, %169 : vector<8x128xf32>
    %172 = vector.extract_strided_slice %149 {offsets = [0, 256], sizes = [8, 128], strides = [1, 1]} : vector<8x384xf32> to vector<8x128xf32>
    %173 = vector.extract_strided_slice %151 {offsets = [0, 256], sizes = [8, 128], strides = [1, 1]} : vector<8x384xf32> to vector<8x128xf32>
    %174 = arith.addf %173, %11 : vector<8x128xf32>
    %175 = arith.mulf %161, %174 : vector<8x128xf32>
    %176 = arith.addf %172, %175 : vector<8x128xf32>
    %177 = math.tanh %176 : vector<8x128xf32>
    %cst_50 = arith.constant 1.000000e+00 : f32
    %178 = vector.broadcast %cst_50 : f32 to vector<8x128xf32>
    %179 = arith.subf %178, %171 : vector<8x128xf32>
    %180 = arith.mulf %179, %177 : vector<8x128xf32>
    %181 = arith.mulf %171, %148 : vector<8x128xf32>
    %182 = arith.addf %180, %181 : vector<8x128xf32>
    %183 = vector.extract_strided_slice %7 {offsets = [40, 0], sizes = [8, 384], strides = [1, 1]} : vector<64x384xf32> to vector<8x384xf32>
    %184 = arith.truncf %182 : vector<8x128xf32> to vector<8x128xbf16>
    %cst_51 = arith.constant dense<0.000000e+00> : vector<8x384xf32>
    %185 = tpu.matmul %184, %8, %cst_51 {dimension_numbers = #tpu.dot_dimension_numbers<[1], [0], [0], [1], [0, 0, 1, 1], [], []>} : vector<8x128xbf16>, vector<128x384xbf16>, vector<8x384xf32> -> vector<8x384xf32>
    %186 = vector.extract_strided_slice %183 {offsets = [0, 0], sizes = [8, 128], strides = [1, 1]} : vector<8x384xf32> to vector<8x128xf32>
    %187 = vector.extract_strided_slice %185 {offsets = [0, 0], sizes = [8, 128], strides = [1, 1]} : vector<8x384xf32> to vector<8x128xf32>
    %188 = arith.addf %186, %187 : vector<8x128xf32>
    %cst_52 = arith.constant 5.000000e-01 : f32
    %189 = vector.broadcast %cst_52 : f32 to vector<8x128xf32>
    %190 = arith.mulf %189, %188 : vector<8x128xf32>
    %191 = math.tanh %190 : vector<8x128xf32>
    %cst_53 = arith.constant 1.000000e+00 : f32
    %192 = vector.broadcast %cst_53 : f32 to vector<8x128xf32>
    %193 = arith.addf %192, %191 : vector<8x128xf32>
    %cst_54 = arith.constant 5.000000e-01 : f32
    %194 = vector.broadcast %cst_54 : f32 to vector<8x128xf32>
    %195 = arith.mulf %194, %193 : vector<8x128xf32>
    %196 = vector.extract_strided_slice %183 {offsets = [0, 128], sizes = [8, 128], strides = [1, 1]} : vector<8x384xf32> to vector<8x128xf32>
    %197 = vector.extract_strided_slice %185 {offsets = [0, 128], sizes = [8, 128], strides = [1, 1]} : vector<8x384xf32> to vector<8x128xf32>
    %198 = arith.addf %196, %197 : vector<8x128xf32>
    %cst_55 = arith.constant 5.000000e-01 : f32
    %199 = vector.broadcast %cst_55 : f32 to vector<8x128xf32>
    %200 = arith.mulf %199, %198 : vector<8x128xf32>
    %201 = math.tanh %200 : vector<8x128xf32>
    %cst_56 = arith.constant 1.000000e+00 : f32
    %202 = vector.broadcast %cst_56 : f32 to vector<8x128xf32>
    %203 = arith.addf %202, %201 : vector<8x128xf32>
    %cst_57 = arith.constant 5.000000e-01 : f32
    %204 = vector.broadcast %cst_57 : f32 to vector<8x128xf32>
    %205 = arith.mulf %204, %203 : vector<8x128xf32>
    %206 = vector.extract_strided_slice %183 {offsets = [0, 256], sizes = [8, 128], strides = [1, 1]} : vector<8x384xf32> to vector<8x128xf32>
    %207 = vector.extract_strided_slice %185 {offsets = [0, 256], sizes = [8, 128], strides = [1, 1]} : vector<8x384xf32> to vector<8x128xf32>
    %208 = arith.addf %207, %11 : vector<8x128xf32>
    %209 = arith.mulf %195, %208 : vector<8x128xf32>
    %210 = arith.addf %206, %209 : vector<8x128xf32>
    %211 = math.tanh %210 : vector<8x128xf32>
    %cst_58 = arith.constant 1.000000e+00 : f32
    %212 = vector.broadcast %cst_58 : f32 to vector<8x128xf32>
    %213 = arith.subf %212, %205 : vector<8x128xf32>
    %214 = arith.mulf %213, %211 : vector<8x128xf32>
    %215 = arith.mulf %205, %182 : vector<8x128xf32>
    %216 = arith.addf %214, %215 : vector<8x128xf32>
    %217 = vector.extract_strided_slice %7 {offsets = [48, 0], sizes = [8, 384], strides = [1, 1]} : vector<64x384xf32> to vector<8x384xf32>
    %218 = arith.truncf %216 : vector<8x128xf32> to vector<8x128xbf16>
    %cst_59 = arith.constant dense<0.000000e+00> : vector<8x384xf32>
    %219 = tpu.matmul %218, %8, %cst_59 {dimension_numbers = #tpu.dot_dimension_numbers<[1], [0], [0], [1], [0, 0, 1, 1], [], []>} : vector<8x128xbf16>, vector<128x384xbf16>, vector<8x384xf32> -> vector<8x384xf32>
    %220 = vector.extract_strided_slice %217 {offsets = [0, 0], sizes = [8, 128], strides = [1, 1]} : vector<8x384xf32> to vector<8x128xf32>
    %221 = vector.extract_strided_slice %219 {offsets = [0, 0], sizes = [8, 128], strides = [1, 1]} : vector<8x384xf32> to vector<8x128xf32>
    %222 = arith.addf %220, %221 : vector<8x128xf32>
    %cst_60 = arith.constant 5.000000e-01 : f32
    %223 = vector.broadcast %cst_60 : f32 to vector<8x128xf32>
    %224 = arith.mulf %223, %222 : vector<8x128xf32>
    %225 = math.tanh %224 : vector<8x128xf32>
    %cst_61 = arith.constant 1.000000e+00 : f32
    %226 = vector.broadcast %cst_61 : f32 to vector<8x128xf32>
    %227 = arith.addf %226, %225 : vector<8x128xf32>
    %cst_62 = arith.constant 5.000000e-01 : f32
    %228 = vector.broadcast %cst_62 : f32 to vector<8x128xf32>
    %229 = arith.mulf %228, %227 : vector<8x128xf32>
    %230 = vector.extract_strided_slice %217 {offsets = [0, 128], sizes = [8, 128], strides = [1, 1]} : vector<8x384xf32> to vector<8x128xf32>
    %231 = vector.extract_strided_slice %219 {offsets = [0, 128], sizes = [8, 128], strides = [1, 1]} : vector<8x384xf32> to vector<8x128xf32>
    %232 = arith.addf %230, %231 : vector<8x128xf32>
    %cst_63 = arith.constant 5.000000e-01 : f32
    %233 = vector.broadcast %cst_63 : f32 to vector<8x128xf32>
    %234 = arith.mulf %233, %232 : vector<8x128xf32>
    %235 = math.tanh %234 : vector<8x128xf32>
    %cst_64 = arith.constant 1.000000e+00 : f32
    %236 = vector.broadcast %cst_64 : f32 to vector<8x128xf32>
    %237 = arith.addf %236, %235 : vector<8x128xf32>
    %cst_65 = arith.constant 5.000000e-01 : f32
    %238 = vector.broadcast %cst_65 : f32 to vector<8x128xf32>
    %239 = arith.mulf %238, %237 : vector<8x128xf32>
    %240 = vector.extract_strided_slice %217 {offsets = [0, 256], sizes = [8, 128], strides = [1, 1]} : vector<8x384xf32> to vector<8x128xf32>
    %241 = vector.extract_strided_slice %219 {offsets = [0, 256], sizes = [8, 128], strides = [1, 1]} : vector<8x384xf32> to vector<8x128xf32>
    %242 = arith.addf %241, %11 : vector<8x128xf32>
    %243 = arith.mulf %229, %242 : vector<8x128xf32>
    %244 = arith.addf %240, %243 : vector<8x128xf32>
    %245 = math.tanh %244 : vector<8x128xf32>
    %cst_66 = arith.constant 1.000000e+00 : f32
    %246 = vector.broadcast %cst_66 : f32 to vector<8x128xf32>
    %247 = arith.subf %246, %239 : vector<8x128xf32>
    %248 = arith.mulf %247, %245 : vector<8x128xf32>
    %249 = arith.mulf %239, %216 : vector<8x128xf32>
    %250 = arith.addf %248, %249 : vector<8x128xf32>
    %251 = vector.extract_strided_slice %7 {offsets = [56, 0], sizes = [8, 384], strides = [1, 1]} : vector<64x384xf32> to vector<8x384xf32>
    %252 = arith.truncf %250 : vector<8x128xf32> to vector<8x128xbf16>
    %cst_67 = arith.constant dense<0.000000e+00> : vector<8x384xf32>
    %253 = tpu.matmul %252, %8, %cst_67 {dimension_numbers = #tpu.dot_dimension_numbers<[1], [0], [0], [1], [0, 0, 1, 1], [], []>} : vector<8x128xbf16>, vector<128x384xbf16>, vector<8x384xf32> -> vector<8x384xf32>
    %254 = vector.extract_strided_slice %251 {offsets = [0, 0], sizes = [8, 128], strides = [1, 1]} : vector<8x384xf32> to vector<8x128xf32>
    %255 = vector.extract_strided_slice %253 {offsets = [0, 0], sizes = [8, 128], strides = [1, 1]} : vector<8x384xf32> to vector<8x128xf32>
    %256 = arith.addf %254, %255 : vector<8x128xf32>
    %cst_68 = arith.constant 5.000000e-01 : f32
    %257 = vector.broadcast %cst_68 : f32 to vector<8x128xf32>
    %258 = arith.mulf %257, %256 : vector<8x128xf32>
    %259 = math.tanh %258 : vector<8x128xf32>
    %cst_69 = arith.constant 1.000000e+00 : f32
    %260 = vector.broadcast %cst_69 : f32 to vector<8x128xf32>
    %261 = arith.addf %260, %259 : vector<8x128xf32>
    %cst_70 = arith.constant 5.000000e-01 : f32
    %262 = vector.broadcast %cst_70 : f32 to vector<8x128xf32>
    %263 = arith.mulf %262, %261 : vector<8x128xf32>
    %264 = vector.extract_strided_slice %251 {offsets = [0, 128], sizes = [8, 128], strides = [1, 1]} : vector<8x384xf32> to vector<8x128xf32>
    %265 = vector.extract_strided_slice %253 {offsets = [0, 128], sizes = [8, 128], strides = [1, 1]} : vector<8x384xf32> to vector<8x128xf32>
    %266 = arith.addf %264, %265 : vector<8x128xf32>
    %cst_71 = arith.constant 5.000000e-01 : f32
    %267 = vector.broadcast %cst_71 : f32 to vector<8x128xf32>
    %268 = arith.mulf %267, %266 : vector<8x128xf32>
    %269 = math.tanh %268 : vector<8x128xf32>
    %cst_72 = arith.constant 1.000000e+00 : f32
    %270 = vector.broadcast %cst_72 : f32 to vector<8x128xf32>
    %271 = arith.addf %270, %269 : vector<8x128xf32>
    %cst_73 = arith.constant 5.000000e-01 : f32
    %272 = vector.broadcast %cst_73 : f32 to vector<8x128xf32>
    %273 = arith.mulf %272, %271 : vector<8x128xf32>
    %274 = vector.extract_strided_slice %251 {offsets = [0, 256], sizes = [8, 128], strides = [1, 1]} : vector<8x384xf32> to vector<8x128xf32>
    %275 = vector.extract_strided_slice %253 {offsets = [0, 256], sizes = [8, 128], strides = [1, 1]} : vector<8x384xf32> to vector<8x128xf32>
    %276 = arith.addf %275, %11 : vector<8x128xf32>
    %277 = arith.mulf %263, %276 : vector<8x128xf32>
    %278 = arith.addf %274, %277 : vector<8x128xf32>
    %279 = math.tanh %278 : vector<8x128xf32>
    %cst_74 = arith.constant 1.000000e+00 : f32
    %280 = vector.broadcast %cst_74 : f32 to vector<8x128xf32>
    %281 = arith.subf %280, %273 : vector<8x128xf32>
    %282 = arith.mulf %281, %279 : vector<8x128xf32>
    %283 = arith.mulf %273, %250 : vector<8x128xf32>
    %284 = arith.addf %282, %283 : vector<8x128xf32>
    %285 = vector.extract_strided_slice %2 {offsets = [56, 0], sizes = [8, 32], strides = [1, 1]} : vector<64x32xbf16> to vector<8x32xbf16>
    %c0_75 = arith.constant 0 : index
    %c0_76 = arith.constant 0 : index
    %286 = vector.load %arg6[%c0_75, %c0_76] : memref<32x384xbf16, #tpu.memory_space<vmem>>, vector<32x384xbf16>
    %cst_77 = arith.constant dense<0.000000e+00> : vector<8x384xf32>
    %287 = tpu.matmul %285, %286, %cst_77 {dimension_numbers = #tpu.dot_dimension_numbers<[1], [0], [0], [1], [0, 0, 1, 1], [], []>} : vector<8x32xbf16>, vector<32x384xbf16>, vector<8x384xf32> -> vector<8x384xf32>
    %c0_78 = arith.constant 0 : index
    %c0_79 = arith.constant 0 : index
    %288 = vector.load %arg7[%c0_78, %c0_79] : memref<1x384xf32, #tpu.memory_space<vmem>>, vector<1x384xf32>
    %289 = vector.broadcast %288 : vector<1x384xf32> to vector<8x384xf32>
    %290 = arith.addf %287, %289 : vector<8x384xf32>
    %291 = vector.extract_strided_slice %290 {offsets = [0, 0], sizes = [8, 128], strides = [1, 1]} : vector<8x384xf32> to vector<8x128xf32>
    %cst_80 = arith.constant 5.000000e-01 : f32
    %292 = vector.broadcast %cst_80 : f32 to vector<8x128xf32>
    %293 = arith.mulf %292, %291 : vector<8x128xf32>
    %294 = math.tanh %293 : vector<8x128xf32>
    %cst_81 = arith.constant 1.000000e+00 : f32
    %295 = vector.broadcast %cst_81 : f32 to vector<8x128xf32>
    %296 = arith.addf %295, %294 : vector<8x128xf32>
    %cst_82 = arith.constant 5.000000e-01 : f32
    %297 = vector.broadcast %cst_82 : f32 to vector<8x128xf32>
    %298 = arith.mulf %297, %296 : vector<8x128xf32>
    %299 = vector.extract_strided_slice %290 {offsets = [0, 128], sizes = [8, 128], strides = [1, 1]} : vector<8x384xf32> to vector<8x128xf32>
    %cst_83 = arith.constant 5.000000e-01 : f32
    %300 = vector.broadcast %cst_83 : f32 to vector<8x128xf32>
    %301 = arith.mulf %300, %299 : vector<8x128xf32>
    %302 = math.tanh %301 : vector<8x128xf32>
    %cst_84 = arith.constant 1.000000e+00 : f32
    %303 = vector.broadcast %cst_84 : f32 to vector<8x128xf32>
    %304 = arith.addf %303, %302 : vector<8x128xf32>
    %cst_85 = arith.constant 5.000000e-01 : f32
    %305 = vector.broadcast %cst_85 : f32 to vector<8x128xf32>
    %306 = arith.mulf %305, %304 : vector<8x128xf32>
    %307 = vector.extract_strided_slice %290 {offsets = [0, 256], sizes = [8, 128], strides = [1, 1]} : vector<8x384xf32> to vector<8x128xf32>
    %c0_86 = arith.constant 0 : index
    %c0_87 = arith.constant 0 : index
    %308 = vector.load %arg8[%c0_86, %c0_87] : memref<1x128xf32, #tpu.memory_space<vmem>>, vector<1x128xf32>
    %309 = vector.broadcast %308 : vector<1x128xf32> to vector<8x128xf32>
    %310 = arith.mulf %298, %309 : vector<8x128xf32>
    %311 = arith.addf %307, %310 : vector<8x128xf32>
    %312 = math.tanh %311 : vector<8x128xf32>
    %cst_88 = arith.constant 1.000000e+00 : f32
    %313 = vector.broadcast %cst_88 : f32 to vector<8x128xf32>
    %314 = arith.subf %313, %306 : vector<8x128xf32>
    %315 = arith.mulf %314, %312 : vector<8x128xf32>
    %316 = tpu.concatenate %284, %315 in 1 : vector<8x128xf32>, vector<8x128xf32> -> vector<8x256xf32>
    %cst_89 = arith.constant dense<0.000000e+00> : vector<8xf32>
    %317 = vector.multi_reduction <add>, %316, %cst_89 [1] : vector<8x256xf32> to vector<8xf32>
    %318 = vector.shape_cast %317 : vector<8xf32> to vector<8x1xf32>
    %cst_90 = arith.constant 5.000000e-03 : f32
    %319 = vector.broadcast %cst_90 : f32 to vector<8x1xf32>
    %320 = arith.mulf %318, %319 : vector<8x1xf32>
    %321 = arith.mulf %316, %316 : vector<8x256xf32>
    %cst_91 = arith.constant dense<0.000000e+00> : vector<8xf32>
    %322 = vector.multi_reduction <add>, %321, %cst_91 [1] : vector<8x256xf32> to vector<8xf32>
    %323 = vector.shape_cast %322 : vector<8xf32> to vector<8x1xf32>
    %cst_92 = arith.constant 5.000000e-03 : f32
    %324 = vector.broadcast %cst_92 : f32 to vector<8x1xf32>
    %325 = arith.mulf %323, %324 : vector<8x1xf32>
    %326 = arith.mulf %320, %320 : vector<8x1xf32>
    %327 = arith.subf %325, %326 : vector<8x1xf32>
    %cst_93 = arith.constant 0.000000e+00 : f32
    %328 = vector.broadcast %cst_93 : f32 to vector<8x1xf32>
    %329 = arith.maximumf %327, %328 : vector<8x1xf32>
    %330 = vector.broadcast %320 : vector<8x1xf32> to vector<8x256xf32>
    %331 = arith.subf %316, %330 : vector<8x256xf32>
    %cst_94 = arith.constant 9.99999974E-6 : f32
    %332 = vector.broadcast %cst_94 : f32 to vector<8x1xf32>
    %333 = arith.addf %329, %332 : vector<8x1xf32>
    %334 = math.rsqrt %333 : vector<8x1xf32>
    %335 = vector.broadcast %334 : vector<8x1xf32> to vector<8x256xf32>
    %336 = arith.mulf %331, %335 : vector<8x256xf32>
    %c0_95 = arith.constant 0 : index
    %c0_96 = arith.constant 0 : index
    %337 = vector.load %arg9[%c0_95, %c0_96] : memref<1x256xf32, #tpu.memory_space<vmem>>, vector<1x256xf32>
    %338 = vector.broadcast %337 : vector<1x256xf32> to vector<8x256xf32>
    %339 = arith.mulf %336, %338 : vector<8x256xf32>
    %c0_97 = arith.constant 0 : index
    %c0_98 = arith.constant 0 : index
    %340 = vector.load %arg10[%c0_97, %c0_98] : memref<1x256xf32, #tpu.memory_space<vmem>>, vector<1x256xf32>
    %341 = vector.broadcast %340 : vector<1x256xf32> to vector<8x256xf32>
    %342 = arith.addf %339, %341 : vector<8x256xf32>
    %343 = arith.truncf %342 : vector<8x256xf32> to vector<8x256xbf16>
    %c0_99 = arith.constant 0 : index
    %c0_100 = arith.constant 0 : index
    %344 = vector.load %arg11[%c0_99, %c0_100] : memref<256x128xbf16, #tpu.memory_space<vmem>>, vector<256x128xbf16>
    %cst_101 = arith.constant dense<0.000000e+00> : vector<8x128xf32>
    %345 = tpu.matmul %343, %344, %cst_101 {dimension_numbers = #tpu.dot_dimension_numbers<[1], [0], [0], [1], [0, 0, 1, 1], [], []>} : vector<8x256xbf16>, vector<256x128xbf16>, vector<8x128xf32> -> vector<8x128xf32>
    %c0_102 = arith.constant 0 : index
    %c0_103 = arith.constant 0 : index
    %346 = vector.load %arg12[%c0_102, %c0_103] : memref<1x128xf32, #tpu.memory_space<vmem>>, vector<1x128xf32>
    %347 = vector.broadcast %346 : vector<1x128xf32> to vector<8x128xf32>
    %348 = arith.addf %345, %347 : vector<8x128xf32>
    %cst_104 = arith.constant 0.000000e+00 : f32
    %349 = vector.broadcast %cst_104 : f32 to vector<8x128xf32>
    %350 = arith.maximumf %348, %349 : vector<8x128xf32>
    %351 = arith.truncf %350 : vector<8x128xf32> to vector<8x128xbf16>
    %c0_105 = arith.constant 0 : index
    %c0_106 = arith.constant 0 : index
    %352 = vector.load %arg13[%c0_105, %c0_106] : memref<128x128xbf16, #tpu.memory_space<vmem>>, vector<128x128xbf16>
    %cst_107 = arith.constant dense<0.000000e+00> : vector<8x128xf32>
    %353 = tpu.matmul %351, %352, %cst_107 {dimension_numbers = #tpu.dot_dimension_numbers<[1], [0], [0], [1], [0, 0, 1, 1], [], []>} : vector<8x128xbf16>, vector<128x128xbf16>, vector<8x128xf32> -> vector<8x128xf32>
    %c0_108 = arith.constant 0 : index
    %c0_109 = arith.constant 0 : index
    %354 = vector.load %arg14[%c0_108, %c0_109] : memref<1x128xf32, #tpu.memory_space<vmem>>, vector<1x128xf32>
    %355 = vector.broadcast %354 : vector<1x128xf32> to vector<8x128xf32>
    %356 = arith.addf %353, %355 : vector<8x128xf32>
    %cst_110 = arith.constant dense<0xFF800000> : vector<8xf32>
    %357 = vector.multi_reduction <maximumf>, %356, %cst_110 [1] : vector<8x128xf32> to vector<8xf32>
    %358 = vector.shape_cast %357 : vector<8xf32> to vector<8x1xf32>
    %359 = vector.broadcast %358 : vector<8x1xf32> to vector<8x128xf32>
    %360 = arith.subf %356, %359 : vector<8x128xf32>
    %361 = math.exp %360 : vector<8x128xf32>
    %cst_111 = arith.constant dense<0.000000e+00> : vector<8xf32>
    %362 = vector.multi_reduction <add>, %361, %cst_111 [1] : vector<8x128xf32> to vector<8xf32>
    %363 = vector.shape_cast %362 : vector<8xf32> to vector<8x1xf32>
    %364 = tpu.reciprocal %363 {approx = true} : vector<8x1xf32> -> vector<8x1xf32>
    %365 = vector.broadcast %364 : vector<8x1xf32> to vector<8x128xf32>
    %366 = arith.mulf %361, %365 : vector<8x128xf32>
    %c0_112 = arith.constant 0 : index
    %c0_113 = arith.constant 0 : index
    %367 = vector.load %arg15[%c0_112, %c0_113] : memref<8x128xf32, #tpu.memory_space<vmem>>, vector<8x128xf32>
    tpu.vector_store %arg15[%c0_112, %c0_113], %366 {strides = array<i32>} : memref<8x128xf32, #tpu.memory_space<vmem>>, vector<8x128xf32>,
    return
  }
  func.func @transform_0(%arg0: i32) -> (i32, i32, i32) {
    %c0_i32 = arith.constant 0 : i32
    %c0_i32_0 = arith.constant 0 : i32
    %c0_i32_1 = arith.constant 0 : i32
    return %c0_i32, %arg0, %c0_i32_0 : i32, i32, i32
  }
  func.func @transform_1(%arg0: i32) -> (i32, i32) {
    %c0_i32 = arith.constant 0 : i32
    %c0_i32_0 = arith.constant 0 : i32
    %c0_i32_1 = arith.constant 0 : i32
    return %c0_i32, %c0_i32_0 : i32, i32
  }
  func.func @transform_2(%arg0: i32) -> (i32, i32) {
    %c0_i32 = arith.constant 0 : i32
    %c0_i32_0 = arith.constant 0 : i32
    %c0_i32_1 = arith.constant 0 : i32
    return %c0_i32, %c0_i32_0 : i32, i32
  }
  func.func @transform_3(%arg0: i32) -> (i32, i32) {
    %c0_i32 = arith.constant 0 : i32
    %c0_i32_0 = arith.constant 0 : i32
    %c0_i32_1 = arith.constant 0 : i32
    return %c0_i32, %c0_i32_0 : i32, i32
  }
  func.func @transform_4(%arg0: i32) -> (i32, i32) {
    %c0_i32 = arith.constant 0 : i32
    %c0_i32_0 = arith.constant 0 : i32
    %c0_i32_1 = arith.constant 0 : i32
    return %c0_i32, %c0_i32_0 : i32, i32
  }
  func.func @transform_5(%arg0: i32) -> (i32, i32) {
    %c0_i32 = arith.constant 0 : i32
    %c0_i32_0 = arith.constant 0 : i32
    %c0_i32_1 = arith.constant 0 : i32
    return %c0_i32, %c0_i32_0 : i32, i32
  }
  func.func @transform_6(%arg0: i32) -> (i32, i32) {
    %c0_i32 = arith.constant 0 : i32
    %c0_i32_0 = arith.constant 0 : i32
    %c0_i32_1 = arith.constant 0 : i32
    return %c0_i32, %c0_i32_0 : i32, i32
  }
  func.func @transform_7(%arg0: i32) -> (i32, i32) {
    %c0_i32 = arith.constant 0 : i32
    %c0_i32_0 = arith.constant 0 : i32
    %c0_i32_1 = arith.constant 0 : i32
    return %c0_i32, %c0_i32_0 : i32, i32
  }
  func.func @transform_8(%arg0: i32) -> (i32, i32) {
    %c0_i32 = arith.constant 0 : i32
    %c0_i32_0 = arith.constant 0 : i32
    %c0_i32_1 = arith.constant 0 : i32
    return %c0_i32, %c0_i32_0 : i32, i32
  }
  func.func @transform_9(%arg0: i32) -> (i32, i32) {
    %c0_i32 = arith.constant 0 : i32
    %c0_i32_0 = arith.constant 0 : i32
    %c0_i32_1 = arith.constant 0 : i32
    return %c0_i32, %c0_i32_0 : i32, i32
  }
  func.func @transform_10(%arg0: i32) -> (i32, i32) {
    %c0_i32 = arith.constant 0 : i32
    %c0_i32_0 = arith.constant 0 : i32
    %c0_i32_1 = arith.constant 0 : i32
    return %c0_i32, %c0_i32_0 : i32, i32
  }
  func.func @transform_11(%arg0: i32) -> (i32, i32) {
    %c0_i32 = arith.constant 0 : i32
    %c0_i32_0 = arith.constant 0 : i32
    %c0_i32_1 = arith.constant 0 : i32
    return %c0_i32, %c0_i32_0 : i32, i32
  }
  func.func @transform_12(%arg0: i32) -> (i32, i32) {
    %c0_i32 = arith.constant 0 : i32
    %c0_i32_0 = arith.constant 0 : i32
    %c0_i32_1 = arith.constant 0 : i32
    return %c0_i32, %c0_i32_0 : i32, i32
  }
  func.func @transform_13(%arg0: i32) -> (i32, i32) {
    %c0_i32 = arith.constant 0 : i32
    %c0_i32_0 = arith.constant 0 : i32
    %c0_i32_1 = arith.constant 0 : i32
    return %c0_i32, %c0_i32_0 : i32, i32
  }
  func.func @transform_14(%arg0: i32) -> (i32, i32) {
    %c0_i32 = arith.constant 0 : i32
    %c0_i32_0 = arith.constant 0 : i32
    return %arg0, %c0_i32 : i32, i32
  }
}

</mosaic_0001>

<bundles_post_ra>
// kernel: tpu_custom_call.1
= control target key start
LH: loop header
LB: loop body
LE: loop exit
PB: predicated region body
PF: predicated region fallthrough
CT: control target
= control target key end

     0   :  { %19 = vsyncpa [#allocation3], 0  ;;  %s2601_s0 = inlined_call_operand.hbm [shape: f32[8,8,32], index: 0, kind: input, shape index: {}]   ;;  %s2602_s1 = inlined_call_operand.hbm [shape: bf16[32,384], index: 1, kind: input, shape index: {}]   ;;  %s2603_s2 = inlined_call_operand.hbm [shape: bf16[128,384], index: 2, kind: input, shape index: {}]   ;;  %s2604_s3 = inlined_call_operand.hbm [shape: f32[1,384], index: 3, kind: input, shape index: {}]   ;;  %s2605_s4 = inlined_call_operand.hbm [shape: f32[1,128], index: 4, kind: input, shape index: {}]   ;;  %s2606_s5 = inlined_call_operand.hbm [shape: bf16[32,384], index: 5, kind: input, shape index: {}]   ;;  %s2607_s6 = inlined_call_operand.vmem [shape: f32[1,384], index: 6, kind: input, shape index: {}]   ;;  %s2608_s7 = inlined_call_operand.hbm [shape: f32[1,128], index: 7, kind: input, shape index: {}]   ;;  %s2609_s8 = inlined_call_operand.vmem [shape: f32[1,256], index: 8, kind: input, shape index: {}]   ;;  %s2610_s9 = inlined_call_operand.vmem [shape: f32[1,256], index: 9, kind: input, shape index: {}]   ;;  %s2611_s10 = inlined_call_operand.hbm [shape: bf16[256,128], index: 10, kind: input, shape index: {}]   ;;  %s2612_s11 = inlined_call_operand.vmem [shape: f32[1,128], index: 11, kind: input, shape index: {}]   ;;  %s2613_s12 = inlined_call_operand.hbm [shape: bf16[128,128], index: 12, kind: input, shape index: {}]   ;;  %s2614_s13 = inlined_call_operand.vmem [shape: f32[1,128], index: 13, kind: input, shape index: {}]   ;;  %s2615_s14 = inlined_call_operand.hbm [shape: f32[8,128], index: 14, kind: output, shape index: {}]  }
   0x1   :  { %20 = vsyncpa [#allocation6], 0 }
   0x2   :  { %21 = vsyncpa [#allocation9], 0 }
   0x3   :  { %22 = vsyncpa [#allocation12], 0 }
   0x4   :  { %23 = vsyncpa [#allocation15], 0  ;;  %s42_s15 = sshll.u32 %s2602_s1, 4  ;;  %s43_s15 = int_to_ptr.hbm [resolvable:$true] %s42_s15 }
   0x5   :  { %24 = vsyncpa [#allocation4], 0  ;;  %s2069_s16 = smov [#allocation5]   ;;  %s69_s20 = sshll.u32 %s2604_s3, 4  ;;  %s70_s20 = int_to_ptr.hbm [resolvable:$true] %s69_s20 }
   0x6   :  { %s44_s17 = sshll.u32 %s2069_s16, 4  ;;  %s2070_s21 = smov 192   ;;  %s45_s17 = int_to_ptr.vmem [resolvable:$true] %s44_s17 }
   0x7   :  { %s2071_s22 = smov 12   ;;  %s2072_s23 = smov [#allocation8]  }
   0x8   :  { %50 = dma.hbm_to_vmem [thread:$0]  %s43_s15, 768, %s45_s17, [#allocation6], %s2070_s21, %s2070_s21, %s2071_s22  }
   0x9   :  { %s71_s24 = sshll.u32 %s2072_s23, 4  ;;  %s90_s26 = sshll.u32 %s2606_s5, 4  ;;  %s72_s24 = int_to_ptr.vmem [resolvable:$true] %s71_s24  ;;  %s91_s26 = int_to_ptr.hbm [resolvable:$true] %s90_s26 }
   0xa   :  { %74 = dma.hbm_to_vmem [thread:$0]  %s70_s20, 48, %s72_s24, [#allocation9]  }
   0xb   :  { %s120_s3 = sshll.u32 %s2611_s10, 4  ;;  %s2073_s29 = smov [#allocation11]   ;;  %s121_s3 = int_to_ptr.hbm [resolvable:$true] %s120_s3 }
   0xc   :  { %s92_s30 = sshll.u32 %s2073_s29, 4  ;;  %s2074_s15 = smov [#allocation14]   ;;  %s93_s30 = int_to_ptr.vmem [resolvable:$true] %s92_s30 }
   0xd   :  { %98 = dma.hbm_to_vmem [thread:$0]  %s91_s26, 768, %s93_s30, [#allocation12], %s2070_s21, %s2070_s21, %s2071_s22  }
   0xe   :  { %s122_s16 = sshll.u32 %s2074_s15, 4  ;;  %s2075_s17 = smov 64   ;;  %s123_s16 = int_to_ptr.vmem [resolvable:$true] %s122_s16 }
   0xf   :  { %s2076_s5 = smov 4   ;;  %s29_s10 = sshll.u32 %s2601_s0, 4  ;;  %s30_s10 = int_to_ptr.hbm [resolvable:$true] %s29_s10 }
  0x10   :  { %128 = dma.hbm_to_vmem [thread:$0]  %s121_s3, 2048, %s123_s16, [#allocation15], %s2075_s17, %s2075_s17, %s2076_s5  }
  0x11   :  { %s2077_s20 = smov [#allocation2]   ;;  %s55_s1 = sshll.u32 %s2603_s2, 4  ;;  %s56_s1 = int_to_ptr.hbm [resolvable:$true] %s55_s1 }
  0x12   :  { %s31_s23 = sshll.u32 %s2077_s20, 4  ;;  %s2078_s26 = smov 128   ;;  %s32_s23 = int_to_ptr.vmem [resolvable:$true] %s31_s23 }
  0x13   :  { %s2079_s27 = smov 8   ;;  %s2080_s28 = smov [#allocation7]  }
  0x14   :  { %37 = dma.hbm_to_vmem [thread:$0]  %s30_s10, 1024, %s32_s23, [#allocation3], %s2078_s26, %s2078_s26, %s2079_s27  }
  0x15   :  { %s57_s29 = sshll.u32 %s2080_s28, 4  ;;  %s80_s15 = sshll.u32 %s2605_s4, 4  ;;  %s58_s29 = int_to_ptr.vmem [resolvable:$true] %s57_s29  ;;  %s81_s15 = int_to_ptr.hbm [resolvable:$true] %s80_s15 }
  0x16   :  { %63 = dma.hbm_to_vmem [thread:$0]  %s56_s1, 3072, %s58_s29, [#allocation6], %s2070_s21, %s2070_s21, %s2071_s22  }
  0x17   :  { %s106_s2 = sshll.u32 %s2608_s7, 4  ;;  %s2081_s18 = smov [#allocation10]   ;;  %s107_s2 = int_to_ptr.hbm [resolvable:$true] %s106_s2 }
  0x18   :  { %s82_s19 = sshll.u32 %s2081_s18, 4  ;;  %s2082_s10 = smov [#allocation13]   ;;  %s83_s19 = int_to_ptr.vmem [resolvable:$true] %s82_s19 }
  0x19   :  { %85 = dma.hbm_to_vmem [thread:$0]  %s81_s15, 16, %s83_s19, [#allocation9]  }
  0x1a   :  { %s108_s20 = sshll.u32 %s2082_s10, 4  ;;  %s135_s4 = sshll.u32 %s2613_s12, 4  ;;  %s109_s20 = int_to_ptr.vmem [resolvable:$true] %s108_s20  ;;  %s136_s4 = int_to_ptr.hbm [resolvable:$true] %s135_s4 }
  0x1b   :  { %111 = dma.hbm_to_vmem [thread:$0]  %s107_s2, 16, %s109_s20, [#allocation12]  }
  0x1c   :  { %s2083_s25 = smov [#allocation16]  }
  0x1d   :  { %s137_s21 = sshll.u32 %s2083_s25, 4  ;;  %s138_s21 = int_to_ptr.vmem [resolvable:$true] %s137_s21 }
  0x1e   :  { %143 = dma.hbm_to_vmem [thread:$0]  %s136_s4, 1024, %s138_s21, [#allocation15], %s2075_s17, %s2075_s17, %s2076_s5  }
  0x1f   :  { %2057 = dma.done.wait [#allocation3], 1024  }
  0x20   :  { %2058 = vsyncadd [#allocation3], 4294966272 }
  0x21   :  { %2059 = dma.done.wait [#allocation6], 3840  }
  0x22   :  { %2060 = vsyncadd [#allocation6], 4294963456 }
  0x23   :  { %2061 = dma.done.wait [#allocation9], 64  }
  0x24   :  { %2062 = vsyncadd [#allocation9], 4294967232 }
  0x25   :  { %2063 = dma.done.wait [#allocation12], 784  }
  0x26   :  { %2064 = vsyncadd [#allocation12], 4294966512 }
  0x27   :  { %2065 = dma.done.wait [#allocation15], 3072  }
  0x28   :  { %2066 = vsyncadd [#allocation15], 4294964224  ;;  %v1433_v0 = vld [vmem:[#allocation5 + $0x18] sm:$0xf]  ;;  %v1678_v1 = vld [vmem:[#allocation5 + $0x20] sm:$0xf0] }
  0x29   :  { %v1421_v2 = vld [vmem:[#allocation5] sm:$0xf]  ;;  %v1434_v3 = vor.u32 %v1678_v1, %v1433_v0  ;;  %v1675_v4 = vld [vmem:[#allocation5 + $0x8] sm:$0xf0]  ;;  %v1541_v5 = vld [vmem:[#allocation7 + $0xa8] sm:$0xf] }
  0x2a   :  { %v1702_v6 = vld [vmem:[#allocation7 + $0xb0] sm:$0xf0]  ;;  %v188_v8 = vld [vmem:[#allocation2 + $0x28] sm:$0xff]  ;;  %v1422_v9 = vor.u32 %v1675_v4, %v1421_v2  ;;  %v1529_v15 = vld [vmem:[#allocation7 + $0x90] sm:$0xf]  ;;  %vm267_vm0 = vcmask 261120  }
  0x2b   :  { %v187_v7 = vld [vmem:[#allocation2 + $0x20] sm:$0xff]  ;;  %1734 = vmatpush.bf16.msra.mxu3 %v1434_v3  ;;  %v196_v11 = vpack.c.bf16 %v188_v8, %v188_v8  ;;  %286 = vmatpush.bf16.msra.mxu0 %v1434_v3  ;;  %v2203_v12 = vor.u32 %v1702_v6, %v1541_v5  ;;  %v1699_v16 = vld [vmem:[#allocation7 + $0x98] sm:$0xf0]  ;;  %v1537_v26 = vld [vmem:[#allocation7 + $0x98] sm:$0xf]  ;;  %s1405_s30 = sshll.u32 %s2615_s14, 4  ;;  %s1406_s30 = int_to_ptr.hbm [resolvable:$true] %s1405_s30 }
  0x2c   :  { %v195_v10 = vpack.c.bf16 %v187_v7, %v187_v7  ;;  %v183_v17 = vld [vmem:[#allocation2] sm:$0xff]  ;;  %v184_v19 = vld [vmem:[#allocation2 + $0x8] sm:$0xff]  ;;  %v2208_v23 = vor.u32 %v1699_v16, %v1529_v15  ;;  %v1696_v28 = vld [vmem:[#allocation7 + $0x80] sm:$0xf0] }
  0x2d   :  { %v228_v14 = vunpack.c.l.b16 %v196_v11  ;;  %v191_v20 = vpack.c.bf16 %v183_v17, %v183_v17  ;;  %v1549_v21 = vld [vmem:[#allocation7 + $0xb0] sm:$0xf]  ;;  %v1703_v22 = vld [vmem:[#allocation7 + $0xb8] sm:$0xf0]  ;;  %v192_v24 = vpack.c.bf16 %v184_v19, %v184_v19  ;;  %v1517_v27 = vld [vmem:[#allocation7 + $0x78] sm:$0xf] }
  0x2e   :  { %v227_v13 = vunpack.c.l.b16 %v195_v10  ;;  %v2210_v25 = vor.u32 %v1703_v22, %v1549_v21  ;;  %v1700_v30 = vld [vmem:[#allocation7 + $0xa0] sm:$0xf0]  ;;  %v190_v33 = vld [vmem:[#allocation2 + $0x38] sm:$0xff]  ;;  %v2218_v35 = vor.u32 %v1696_v28, %v1517_v27  ;;  %v1525_v37 = vld [vmem:[#allocation7 + $0x80] sm:$0xf] }
  0x2f   :  { %1735 = vmatpush.bf16.msra.mxu3 %v1422_v9  ;;  %287 = vmatpush.bf16.msra.mxu0 %v1422_v9  ;;  %v223_v29 = vunpack.c.l.b16 %v191_v20  ;;  %v224_v31 = vunpack.c.l.b16 %v192_v24  ;;  %v189_v32 = vld [vmem:[#allocation2 + $0x30] sm:$0xff]  ;;  %v2215_v34 = vor.u32 %v1700_v30, %v1537_v26  ;;  %v1697_v38 = vld [vmem:[#allocation7 + $0x88] sm:$0xf0]  ;;  %v2222_v42 = vpack.c.bf16 %v190_v33, %v190_v33  ;;  %v1493_v44 = vld [vmem:[#allocation7 + $0x48] sm:$0xf] }
  0x30   :  { %v2205_v18 = vpack.c.b16 %v228_v14, %v227_v13  ;;  %v1505_v39 = vld [vmem:[#allocation7 + $0x60] sm:$0xf]  ;;  %v1693_v40 = vld [vmem:[#allocation7 + $0x68] sm:$0xf0]  ;;  %v197_v41 = vpack.c.bf16 %v189_v32, %v189_v32  ;;  %v2227_v45 = vor.u32 %v1697_v38, %v1525_v37  ;;  %v1441_v47 = vld [vmem:[#allocation5 + $0x20] sm:$0xf] }
  0x31   :  { %v2220_v36 = vpack.c.b16 %v224_v31, %v223_v29  ;;  %v185_v43 = vld [vmem:[#allocation2 + $0x10] sm:$0xff]  ;;  %v186_v46 = vld [vmem:[#allocation2 + $0x18] sm:$0xff]  ;;  %v1679_v48 = vld [vmem:[#allocation5 + $0x28] sm:$0xf0]  ;;  %v2230_v49 = vor.u32 %v1693_v40, %v1505_v39  ;;  %v230_v56 = vunpack.c.l.b16 %v2222_v42 }
  0x32   :  { %1445 = vmatmul.msk.bf16.vlgmr.msra.gmra.mxu3 %vm267_vm0, %v2205_v18  ;;  %v1513_v50 = vld [vmem:[#allocation7 + $0x68] sm:$0xf]  ;;  %v1694_v51 = vld [vmem:[#allocation7 + $0x70] sm:$0xf0]  ;;  %v1442_v52 = vor.u32 %v1679_v48, %v1441_v47  ;;  %v1701_v54 = vld [vmem:[#allocation7 + $0xac] sm:$0xf]  ;;  %v229_v55 = vunpack.c.l.b16 %v197_v41  ;;  %v193_v58 = vpack.c.bf16 %v185_v43, %v185_v43  ;;  %v194_v59 = vpack.c.bf16 %v186_v46, %v186_v46 }
  0x33   :  { %531 = vmatpush.bf16.msrb.mxu3 %v2203_v12  ;;  %557 = vmatpush.bf16.msrb.mxu0 %v2210_v25  ;;  %v1690_v53 = vld [vmem:[#allocation7 + $0x50] sm:$0xf0]  ;;  %v1543_v57 = vld [vmem:[#allocation7 + $0xb4] sm:$0xf0]  ;;  %v2234_v60 = vor.u32 %v1694_v51, %v1513_v50  ;;  %v1676_v62 = vld [vmem:[#allocation5 + $0x10] sm:$0xf0] }
  0x34   :  { %1443 = vmatmul.msk.bf16.vlgmr.msra.gmra.mxu0 %vm267_vm0, %v2220_v36  ;;  %344 = vmatpush.bf16.msra.mxu2 %v1442_v52  ;;  %v1429_v61 = vld [vmem:[#allocation5 + $0x8] sm:$0xf]  ;;  %v2237_v63 = vor.u32 %v1690_v53, %v1493_v44  ;;  %v1481_v0 = vld [vmem:[#allocation7 + $0x30] sm:$0xf]  ;;  %v1691_v2 = vld [vmem:[#allocation7 + $0x58] sm:$0xf0]  ;;  %v2239_v5 = vor.u32 %v1701_v54, %v1543_v57  ;;  %v2241_v8 = vpack.c.b16 %v230_v56, %v229_v55  ;;  %v225_v11 = vunpack.c.l.b16 %v193_v58 }
  0x35   :  { %v1501_v1 = vld [vmem:[#allocation7 + $0x50] sm:$0xf]  ;;  %v1430_v3 = vor.u32 %v1676_v62, %v1429_v61  ;;  %v1687_v4 = vld [vmem:[#allocation7 + $0x38] sm:$0xf0]  ;;  %v1677_v6 = vld [vmem:[#allocation5 + $0x1c] sm:$0xf]  ;;  %v226_v13 = vunpack.c.l.b16 %v194_v59 }
  0x36   :  { %v1435_v7 = vld [vmem:[#allocation5 + $0x24] sm:$0xf0]  ;;  %v1698_v9 = vld [vmem:[#allocation7 + $0x94] sm:$0xf]  ;;  %v1531_v10 = vld [vmem:[#allocation7 + $0x9c] sm:$0xf0]  ;;  %v2244_v15 = vor.u32 %v1691_v2, %v1501_v1  ;;  %v2248_v16 = vor.u32 %v1687_v4, %v1481_v0 }
  0x37   :  { %532 = vmatpush.bf16.msrb.mxu3 %v2208_v23  ;;  %558 = vmatpush.bf16.msrb.mxu0 %v2215_v34  ;;  %v1438_v14 = vor.u32 %v1677_v6, %v1435_v7  ;;  %v1469_v17 = vld [vmem:[#allocation7 + $0x18] sm:$0xf]  ;;  %v1688_v20 = vld [vmem:[#allocation7 + $0x40] sm:$0xf0]  ;;  %v2250_v22 = vor.u32 %v1698_v9, %v1531_v10  ;;  %v1674_v24 = vld [vmem:[#allocation5 + $0x4] sm:$0xf]  ;;  %v232_v27 = vpack.c.b16 %v226_v13, %v225_v11 }
  0x38   :  { %345 = vmatpush.bf16.msra.mxu2 %v1430_v3  ;;  %v1489_v19 = vld [vmem:[#allocation7 + $0x38] sm:$0xf]  ;;  %v1684_v21 = vld [vmem:[#allocation7 + $0x20] sm:$0xf0]  ;;  %v1423_v26 = vld [vmem:[#allocation5 + $0xc] sm:$0xf0] }
  0x39   :  { %315 = vmatpush.bf16.msra.mxu1 %v1438_v14  ;;  %v1426_v28 = vor.u32 %v1674_v24, %v1423_v26  ;;  %v1695_v29 = vld [vmem:[#allocation7 + $0x7c] sm:$0xf]  ;;  %v1519_v30 = vld [vmem:[#allocation7 + $0x84] sm:$0xf0]  ;;  %v2257_v31 = vor.u32 %v1688_v20, %v1489_v19  ;;  %v2261_v32 = vor.u32 %v1684_v21, %v1469_v17  ;;  %v1477_v33 = vld [vmem:[#allocation7 + $0x20] sm:$0xf] }
  0x3a   :  { %v1685_v37 = vld [vmem:[#allocation7 + $0x28] sm:$0xf0]  ;;  %v1457_v38 = vld [vmem:[#allocation7] sm:$0xf]  ;;  %v2265_v40 = vor.u32 %v1695_v29, %v1519_v30  ;;  %v1692_v41 = vld [vmem:[#allocation7 + $0x64] sm:$0xf] }
  0x3b   :  { %533 = vmatpush.bf16.msrb.mxu3 %v2218_v35  ;;  %559 = vmatpush.bf16.msrb.mxu0 %v2227_v45  ;;  %v1681_v39 = vld [vmem:[#allocation7 + $0x8] sm:$0xf0]  ;;  %v1507_v43 = vld [vmem:[#allocation7 + $0x6c] sm:$0xf0]  ;;  %v2268_v44 = vor.u32 %v1685_v37, %v1477_v33  ;;  %v1465_v47 = vld [vmem:[#allocation7 + $0x8] sm:$0xf] }
  0x3c   :  { %602 = vmatpush.bf16.msrb.mxu2 %v2239_v5  ;;  %v2273_v46 = vor.u32 %v1681_v39, %v1457_v38  ;;  %v1682_v48 = vld [vmem:[#allocation7 + $0x10] sm:$0xf0]  ;;  %v2277_v50 = vor.u32 %v1692_v41, %v1507_v43  ;;  %v1689_v51 = vld [vmem:[#allocation7 + $0x4c] sm:$0xf]  ;;  %v1495_v52 = vld [vmem:[#allocation7 + $0x54] sm:$0xf0] }
  0x3d   :  { %1451 = vmatmul.msk.bf16.vlgmr.msra.gmra.mxu2 %vm267_vm0, %v2220_v36  ;;  %316 = vmatpush.bf16.msra.mxu1 %v1426_v28  ;;  %v2280_v53 = vor.u32 %v1682_v48, %v1465_v47  ;;  %v1686_v54 = vld [vmem:[#allocation7 + $0x34] sm:$0xf]  ;;  %v1483_v55 = vld [vmem:[#allocation7 + $0x3c] sm:$0xf0]  ;;  %v2084_v56 = vmov 0  }
  0x3e   :  { %v2293_v57 = vor.u32 %v1686_v54, %v1483_v55  ;;  %v1683_v58 = vld [vmem:[#allocation7 + $0x1c] sm:$0xf]  ;;  %v1471_v59 = vld [vmem:[#allocation7 + $0x24] sm:$0xf0]  ;;  %v1680_v62 = vld [vmem:[#allocation7 + $0x4] sm:$0xf] }
  0x3f   :  { %534 = vmatpush.bf16.msrb.mxu3 %v2230_v49  ;;  %560 = vmatpush.bf16.msrb.mxu0 %v2234_v60  ;;  %v2299_v61 = vor.u32 %v1683_v58, %v1471_v59  ;;  %v1459_v0 = vld [vmem:[#allocation7 + $0xc] sm:$0xf0]  ;;  %v2385_v43 = vld [vmem:[#allocation10] ss:$0 sm:$0xff] }
  0x40   :  { %603 = vmatpush.bf16.msrb.mxu2 %v2250_v22  ;;  %1447 = vmatmul.msk.bf16.vlgmr.msra.gmra.mxu1 %vm267_vm0, %v2220_v36  ;;  %v2286_v36 = vor.u32 %v1689_v51, %v1495_v52  ;;  %v2306_v1 = vor.u32 %v1680_v62, %v1459_v0 }
  0x41   :  { %589 = vmatpush.bf16.msrb.mxu1 %v2203_v12 }
  0x42   :  { %1446 = vmatmul.msk.bf16.gmra.mxu3 %vm267_vm0, %v2241_v8 }
  0x43   :  { %535 = vmatpush.bf16.msrb.mxu3 %v2237_v63  ;;  %561 = vmatpush.bf16.msrb.mxu0 %v2244_v15 }
  0x44   :  { %1444 = vmatmul.msk.bf16.gmra.mxu0 %vm267_vm0, %v232_v27  ;;  %604 = vmatpush.bf16.msrb.mxu2 %v2265_v40 }
  0x45   :  { %590 = vmatpush.bf16.msrb.mxu1 %v2208_v23 }
  0x47   :  { %536 = vmatpush.bf16.msrb.mxu3 %v2248_v16  ;;  %562 = vmatpush.bf16.msrb.mxu0 %v2257_v31 }
  0x48   :  { %605 = vmatpush.bf16.msrb.mxu2 %v2277_v50 }
  0x49   :  { %591 = vmatpush.bf16.msrb.mxu1 %v2218_v35 }
  0x4b   :  { %537 = vmatpush.bf16.msrb.mxu3 %v2261_v32  ;;  %563 = vmatpush.bf16.msrb.mxu0 %v2268_v44 }
  0x4c   :  { %606 = vmatpush.bf16.msrb.mxu2 %v2286_v36 }
  0x4d   :  { %1452 = vmatmul.msk.bf16.gmra.mxu2 %vm267_vm0, %v232_v27  ;;  %592 = vmatpush.bf16.msrb.mxu1 %v2230_v49 }
  0x4f   :  { %538 = vmatpush.bf16.msrb.mxu3 %v2273_v46  ;;  %564 = vmatpush.bf16.msrb.mxu0 %v2280_v53 }
  0x50   :  { %607 = vmatpush.bf16.msrb.mxu2 %v2293_v57  ;;  %1448 = vmatmul.msk.bf16.gmra.mxu1 %vm267_vm0, %v232_v27 }
  0x51   :  { %593 = vmatpush.bf16.msrb.mxu1 %v2237_v63 }
  0x52   :  { %539 = vmatmul.bf16.vlgmr.msrb.gmra.mxu3 %v2084_v56 }
  0x53   :  { %544 = vmatpush.bf16.msra.mxu3 %v2239_v5  ;;  %647 = vmatpush.bf16.msra.mxu0 %v2203_v12 }
  0x54   :  { %565 = vmatmul.bf16.vlgmr.msrb.gmra.mxu0 %v2084_v56  ;;  %608 = vmatpush.bf16.msrb.mxu2 %v2299_v61 }
  0x55   :  { %594 = vmatpush.bf16.msrb.mxu1 %v2248_v16 }
  0x57   :  { %545 = vmatpush.bf16.msra.mxu3 %v2250_v22  ;;  %648 = vmatpush.bf16.msra.mxu0 %v2208_v23 }
  0x58   :  { %609 = vmatpush.bf16.msrb.mxu2 %v2306_v1 }
  0x59   :  { %595 = vmatpush.bf16.msrb.mxu1 %v2261_v32 }
  0x5b   :  { %546 = vmatpush.bf16.msra.mxu3 %v2265_v40  ;;  %649 = vmatpush.bf16.msra.mxu0 %v2218_v35 }
  0x5c   :  { %673 = vmatpush.bf16.msra.mxu2 %v2210_v25 }
  0x5d   :  { %1453 = vmatmul.msk.bf16.gmra.mxu2 %vm267_vm0, %v2205_v18  ;;  %596 = vmatpush.bf16.msrb.mxu1 %v2273_v46 }
  0x5f   :  { %547 = vmatpush.bf16.msra.mxu3 %v2277_v50  ;;  %650 = vmatpush.bf16.msra.mxu0 %v2230_v49 }
  0x60   :  { %674 = vmatpush.bf16.msra.mxu2 %v2215_v34  ;;  %1449 = vmatmul.msk.bf16.gmra.mxu1 %vm267_vm0, %v2205_v18  ;;  %v207_v18 = vld [vmem:[#allocation8] sm:$0x7] }
  0x61   :  { %660 = vmatpush.bf16.msra.mxu1 %v2239_v5  ;;  %v209_v2 = vperm.slane %v207_v18, 0  ;;  %v2383_v39 = vperm.slane %v207_v18, 1  ;;  %v2389_v54 = vperm.slane %v207_v18, 2 }
  0x63   :  { %548 = vmatpush.bf16.msra.mxu3 %v2286_v36  ;;  %651 = vmatpush.bf16.msra.mxu0 %v2237_v63 }
  0x64   :  { %675 = vmatpush.bf16.msra.mxu2 %v2227_v45 }
  0x65   :  { %661 = vmatpush.bf16.msra.mxu1 %v2250_v22 }
  0x67   :  { %549 = vmatpush.bf16.msra.mxu3 %v2293_v57  ;;  %652 = vmatpush.bf16.msra.mxu0 %v2248_v16 }
  0x68   :  { %676 = vmatpush.bf16.msra.mxu2 %v2234_v60 }
  0x69   :  { %662 = vmatpush.bf16.msra.mxu1 %v2265_v40 }
  0x6b   :  { %550 = vmatpush.bf16.msra.mxu3 %v2299_v61  ;;  %653 = vmatpush.bf16.msra.mxu0 %v2261_v32 }
  0x6c   :  { %677 = vmatpush.bf16.msra.mxu2 %v2244_v15 }
  0x6d   :  { %663 = vmatpush.bf16.msra.mxu1 %v2277_v50  ;;  %1454 = vmatmul.msk.bf16.gmra.mxu2 %vm267_vm0, %v2241_v8 }
  0x6f   :  { %551 = vmatpush.bf16.msra.mxu3 %v2306_v1  ;;  %654 = vmatpush.bf16.msra.mxu0 %v2273_v46 }
  0x70   :  { %678 = vmatpush.bf16.msra.mxu2 %v2257_v31  ;;  %1450 = vmatmul.msk.bf16.gmra.mxu1 %vm267_vm0, %v2241_v8 }
  0x71   :  { %664 = vmatpush.bf16.msra.mxu1 %v2286_v36 }
  0x72   :  { %552 = vmatmul.bf16.vlgmr.msra.gmra.mxu3 %v2084_v56 }
  0x73   :  { %615 = vmatpush.bf16.msrb.mxu3 %v2210_v25  ;;  %718 = vmatpush.bf16.msrb.mxu0 %v2239_v5 }
  0x74   :  { %679 = vmatpush.bf16.msra.mxu2 %v2268_v44 }
  0x75   :  { %665 = vmatpush.bf16.msra.mxu1 %v2293_v57 }
  0x77   :  { %616 = vmatpush.bf16.msrb.mxu3 %v2215_v34  ;;  %719 = vmatpush.bf16.msrb.mxu0 %v2250_v22 }
  0x78   :  { %680 = vmatpush.bf16.msra.mxu2 %v2280_v53 }
  0x79   :  { %666 = vmatpush.bf16.msra.mxu1 %v2299_v61 }
  0x7b   :  { %617 = vmatpush.bf16.msrb.mxu3 %v2227_v45  ;;  %720 = vmatpush.bf16.msrb.mxu0 %v2265_v40 }
  0x7d   :  { %667 = vmatpush.bf16.msra.mxu1 %v2306_v1 }
  0x7f   :  { %618 = vmatpush.bf16.msrb.mxu3 %v2234_v60  ;;  %721 = vmatpush.bf16.msrb.mxu0 %v2277_v50 }
  0x83   :  { %619 = vmatpush.bf16.msrb.mxu3 %v2244_v15  ;;  %722 = vmatpush.bf16.msrb.mxu0 %v2286_v36 }
  0x87   :  { %620 = vmatpush.bf16.msrb.mxu3 %v2257_v31  ;;  %723 = vmatpush.bf16.msrb.mxu0 %v2293_v57 }
  0x8b   :  { %621 = vmatpush.bf16.msrb.mxu3 %v2268_v44  ;;  %724 = vmatpush.bf16.msrb.mxu0 %v2299_v61 }
  0x8f   :  { %622 = vmatpush.bf16.msrb.mxu3 %v2280_v53  ;;  %725 = vmatpush.bf16.msrb.mxu0 %v2306_v1 }
  0x93   :  { %705 = vmatpush.bf16.msra.mxu3 %v2203_v12 }
  0x97   :  { %706 = vmatpush.bf16.msra.mxu3 %v2208_v23 }
  0x9b   :  { %707 = vmatpush.bf16.msra.mxu3 %v2218_v35 }
  0x9f   :  { %708 = vmatpush.bf16.msra.mxu3 %v2230_v49 }
  0xa3   :  { %709 = vmatpush.bf16.msra.mxu3 %v2237_v63 }
  0xa7   :  { %710 = vmatpush.bf16.msra.mxu3 %v2248_v16 }
  0xab   :  { %711 = vmatpush.bf16.msra.mxu3 %v2261_v32 }
  0xaf   :  { %712 = vmatpush.bf16.msra.mxu3 %v2273_v46 }
  0xb1   :  { %v289_v3 = vpop.f32.mrf.mxu0 }
  0xb2   :  { %v290_v27 = vadd.f32 %v289_v3, %v209_v2 }
  0xb5   :  { %v299_v4 = vpop.f32.mrf.mxu3 }
  0xb6   :  { %v2369_v6 = vadd.f32 %v299_v4, %v209_v2 }
  0xb9   :  { %v291_v7 = vpop.f32.mrf.mxu0 }
  0xba   :  { %v2371_v8 = vadd.f32 %v291_v7, %v209_v2 }
  0xbd   :  { %v301_v9 = vpop.f32.mrf.mxu3  ;;  %v318_v47 = vpop.f32.mrf.mxu1 }
  0xbe   :  { %v2373_v10 = vadd.f32 %v301_v9, %v209_v2  ;;  %v319_v48 = vadd.f32 %v318_v47, %v2383_v39 }
  0xc0   :  { %v347_v55 = vpop.f32.mrf.mxu2 }
  0xc1   :  { %v294_v11 = vpop.f32.mrf.mxu0  ;;  %v348_v62 = vadd.f32 %v347_v55, %v2389_v54 }
  0xc2   :  { %v2375_v13 = vadd.f32 %v294_v11, %v209_v2 }
  0xc5   :  { %v304_v14 = vpop.f32.mrf.mxu3 }
  0xc6   :  { %v2377_v17 = vadd.f32 %v304_v14, %v209_v2 }
  0xc9   :  { %v296_v19 = vpop.f32.mrf.mxu0 }
  0xca   :  { %v2379_v20 = vadd.f32 %v296_v19, %v209_v2 }
  0xcd   :  { %v306_v21 = vpop.f32.mrf.mxu3 }
  0xce   :  { %v2381_v24 = vadd.f32 %v306_v21, %v209_v2 }
  0xd0   :  { %2616 = vst [vmem:[#allocation24_spill] sm:$0xff] %v2381_v24 }
  0xd1   :  { %v566_v26 = vpop.f32.mrf.mxu0 }
  0xd2   :  { %v580_v52 = vadd.f32 %v2385_v43, %v566_v26 }
  0xd5   :  { %v540_v28 = vpop.f32.mrf.mxu3 }
  0xd6   :  { %v570_v29 = vadd.f32 %v540_v28, %v290_v27  ;;  %v320_v27 = vpop.f32.mrf.mxu1  ;;  %v349_v28 = vpop.f32.mrf.mxu2 }
  0xd7   :  { %v350_v24 = vadd.f32 %v349_v28, %v2389_v54 }
  0xd8   :  { %v571_v33 = vmul.f32 0.5, %v570_v29 }
  0xd9   :  { %v568_v30 = vpop.f32.mrf.mxu0 }
  0xda   :  { %1757 = vtanh.f32 %v571_v33 }
  0xdd   :  { %v542_v37 = vpop.f32.mrf.mxu3 }
  0xde   :  { %v2420_v29 = vpop.f32.mrf.mxu1  ;;  %v2422_v30 = vpop.f32.mrf.mxu2 }
  0xe0   :  { %v1758_v38 = vpop.eup %1757 }
  0xe1   :  { %v573_v41 = vadd.f32 1.0, %v1758_v38 }
  0xe3   :  { %v574_v51 = vmul.f32 0.5, %v573_v41 }
  0xe5   :  { %v581_v59 = vmul.f32 %v580_v52, %v574_v51 }
  0xe6   :  { %v2424_v33 = vpop.f32.mrf.mxu1  ;;  %v2426_v37 = vpop.f32.mrf.mxu2 }
  0xe7   :  { %v582_v2 = vadd.f32 %v581_v59, %v348_v62 }
  0xee   :  { %v2428_v38 = vpop.f32.mrf.mxu1  ;;  %v2430_v41 = vpop.f32.mrf.mxu2 }
  0xf5   :  { %v553_v56 = vpop.f32.mrf.mxu3 }
  0xf6   :  { %v575_v58 = vadd.f32 %v553_v56, %v319_v48  ;;  %v2432_v47 = vpop.f32.mrf.mxu1  ;;  %v2434_v48 = vpop.f32.mrf.mxu2 }
  0xf8   :  { %v576_v0 = vmul.f32 0.5, %v575_v58 }
  0xfa   :  { %1759 = vtanh.f32 %v576_v0  ;;  %v321_v0 = vadd.f32 %v320_v27, %v2383_v39 }
  0xfb   :  { %1761 = vtanh.f32 %v582_v2 }
  0xfd   :  { %v555_v3 = vpop.f32.mrf.mxu3 }
  0xfe   :  { %v2436_v51 = vpop.f32.mrf.mxu1  ;;  %v2438_v52 = vpop.f32.mrf.mxu2 }
 0x100   :  { %v1760_v4 = vpop.eup %1759 }
 0x101   :  { %v578_v7 = vadd.f32 1.0, %v1760_v4  ;;  %v1762_v14 = vpop.eup %1761 }
 0x103   :  { %v579_v9 = vmul.f32 0.5, %v578_v7 }
 0x105   :  { %v584_v11 = vsub.f32 1.0, %v579_v9  ;;  %v586_v21 = vmul.f32 0.0, %v579_v9 }
 0x106   :  { %v2440_v55 = vpop.f32.mrf.mxu1  ;;  %v2442_v56 = vpop.f32.mrf.mxu2 }
 0x107   :  { %v585_v19 = vmul.f32 %v1762_v14, %v584_v11  ;;  %2617 = vst [vmem:[#allocation25_spill] sm:$0xff] %v2442_v56 }
 0x109   :  { %v2392_v18 = vadd.f32 %v586_v21, %v585_v19 }
 0x10b   :  { %v588_v26 = vpack.c.bf16 %v2392_v18, %v2392_v18 }
 0x10d   :  { %597 = vmatmul.bf16.vlgmr.msrb.gmra.mxu1 %v588_v26  ;;  %610 = vmatmul.bf16.vlgmr.msrb.gmra.mxu2 %v588_v26 }
 0x10e   :  { %623 = vmatmul.bf16.vlgmr.msrb.gmra.mxu3 %v588_v26  ;;  %731 = vmatpush.bf16.msrb.mxu1 %v2210_v25 }
 0x10f   :  { %763 = vmatpush.bf16.msrb.mxu2 %v2203_v12  ;;  %776 = vmatpush.bf16.msrb.mxu3 %v2239_v5 }
 0x112   :  { %732 = vmatpush.bf16.msrb.mxu1 %v2215_v34 }
 0x113   :  { %764 = vmatpush.bf16.msrb.mxu2 %v2208_v23  ;;  %777 = vmatpush.bf16.msrb.mxu3 %v2250_v22 }
 0x116   :  { %733 = vmatpush.bf16.msrb.mxu1 %v2227_v45 }
 0x117   :  { %765 = vmatpush.bf16.msrb.mxu2 %v2218_v35  ;;  %778 = vmatpush.bf16.msrb.mxu3 %v2265_v40 }
 0x11a   :  { %734 = vmatpush.bf16.msrb.mxu1 %v2234_v60 }
 0x11b   :  { %766 = vmatpush.bf16.msrb.mxu2 %v2230_v49  ;;  %779 = vmatpush.bf16.msrb.mxu3 %v2277_v50 }
 0x11e   :  { %735 = vmatpush.bf16.msrb.mxu1 %v2244_v15 }
 0x11f   :  { %767 = vmatpush.bf16.msrb.mxu2 %v2237_v63  ;;  %780 = vmatpush.bf16.msrb.mxu3 %v2286_v36 }
 0x122   :  { %736 = vmatpush.bf16.msrb.mxu1 %v2257_v31 }
 0x123   :  { %768 = vmatpush.bf16.msrb.mxu2 %v2248_v16  ;;  %781 = vmatpush.bf16.msrb.mxu3 %v2293_v57 }
 0x126   :  { %737 = vmatpush.bf16.msrb.mxu1 %v2268_v44 }
 0x127   :  { %769 = vmatpush.bf16.msrb.mxu2 %v2261_v32  ;;  %782 = vmatpush.bf16.msrb.mxu3 %v2299_v61 }
 0x12a   :  { %738 = vmatpush.bf16.msrb.mxu1 %v2280_v53 }
 0x12b   :  { %770 = vmatpush.bf16.msrb.mxu2 %v2273_v46  ;;  %783 = vmatpush.bf16.msrb.mxu3 %v2306_v1 }
 0x18a   :  { %v598_v58 = vpop.f32.mrf.mxu1 }
 0x18b   :  { %v628_v59 = vadd.f32 %v598_v58, %v2371_v8 }
 0x18d   :  { %v629_v62 = vmul.f32 0.5, %v628_v59 }
 0x18f   :  { %1763 = vtanh.f32 %v629_v62 }
 0x190   :  { %v611_v2 = vpop.f32.mrf.mxu2 }
 0x191   :  { %v633_v3 = vadd.f32 %v611_v2, %v321_v0  ;;  %v624_v4 = vpop.f32.mrf.mxu3 }
 0x192   :  { %v600_v7 = vpop.f32.mrf.mxu1  ;;  %v638_v21 = vadd.f32 %v2385_v43, %v624_v4 }
 0x193   :  { %v634_v9 = vmul.f32 0.5, %v633_v3 }
 0x195   :  { %v1764_v11 = vpop.eup %1763  ;;  %1765 = vtanh.f32 %v634_v9 }
 0x196   :  { %v631_v14 = vadd.f32 1.0, %v1764_v11 }
 0x198   :  { %v632_v19 = vmul.f32 0.5, %v631_v14  ;;  %v613_v26 = vpop.f32.mrf.mxu2 }
 0x199   :  { %v626_v56 = vpop.f32.mrf.mxu3 }
 0x19a   :  { %v639_v8 = vmul.f32 %v638_v21, %v632_v19 }
 0x19b   :  { %v1766_v58 = vpop.eup %1765 }
 0x19c   :  { %v636_v59 = vadd.f32 1.0, %v1766_v58  ;;  %v640_v27 = vadd.f32 %v639_v8, %v350_v24  ;;  %v324_v24 = vadd.f32 %v2420_v29, %v2383_v39  ;;  %v353_v29 = vadd.f32 %v2422_v30, %v2389_v54 }
 0x19e   :  { %1767 = vtanh.f32 %v640_v27  ;;  %v637_v62 = vmul.f32 0.5, %v636_v59 }
 0x1a0   :  { %v642_v0 = vsub.f32 1.0, %v637_v62  ;;  %v644_v3 = vmul.f32 %v637_v62, %v2392_v18 }
 0x1a4   :  { %v1768_v2 = vpop.eup %1767 }
 0x1a5   :  { %v643_v7 = vmul.f32 %v1768_v2, %v642_v0 }
 0x1a7   :  { %v645_v9 = vadd.f32 %v644_v3, %v643_v7 }
 0x1a9   :  { %v646_v11 = vpack.c.bf16 %v645_v9, %v645_v9 }
 0x1ab   :  { %655 = vmatmul.bf16.vlgmr.msra.gmra.mxu0 %v646_v11  ;;  %668 = vmatmul.bf16.vlgmr.msra.gmra.mxu1 %v646_v11 }
 0x1ac   :  { %681 = vmatmul.bf16.vlgmr.msra.gmra.mxu2 %v646_v11  ;;  %789 = vmatpush.bf16.msra.mxu0 %v2210_v25 }
 0x1ad   :  { %821 = vmatpush.bf16.msra.mxu1 %v2203_v12  ;;  %834 = vmatpush.bf16.msra.mxu2 %v2239_v5 }
 0x1b0   :  { %790 = vmatpush.bf16.msra.mxu0 %v2215_v34 }
 0x1b1   :  { %822 = vmatpush.bf16.msra.mxu1 %v2208_v23  ;;  %835 = vmatpush.bf16.msra.mxu2 %v2250_v22 }
 0x1b4   :  { %791 = vmatpush.bf16.msra.mxu0 %v2227_v45 }
 0x1b5   :  { %823 = vmatpush.bf16.msra.mxu1 %v2218_v35  ;;  %836 = vmatpush.bf16.msra.mxu2 %v2265_v40 }
 0x1b8   :  { %792 = vmatpush.bf16.msra.mxu0 %v2234_v60 }
 0x1b9   :  { %824 = vmatpush.bf16.msra.mxu1 %v2230_v49  ;;  %837 = vmatpush.bf16.msra.mxu2 %v2277_v50 }
 0x1bc   :  { %793 = vmatpush.bf16.msra.mxu0 %v2244_v15 }
 0x1bd   :  { %825 = vmatpush.bf16.msra.mxu1 %v2237_v63  ;;  %838 = vmatpush.bf16.msra.mxu2 %v2286_v36 }
 0x1c0   :  { %794 = vmatpush.bf16.msra.mxu0 %v2257_v31 }
 0x1c1   :  { %826 = vmatpush.bf16.msra.mxu1 %v2248_v16  ;;  %839 = vmatpush.bf16.msra.mxu2 %v2293_v57 }
 0x1c4   :  { %795 = vmatpush.bf16.msra.mxu0 %v2268_v44 }
 0x1c5   :  { %827 = vmatpush.bf16.msra.mxu1 %v2261_v32  ;;  %840 = vmatpush.bf16.msra.mxu2 %v2299_v61 }
 0x1c8   :  { %796 = vmatpush.bf16.msra.mxu0 %v2280_v53 }
 0x1c9   :  { %828 = vmatpush.bf16.msra.mxu1 %v2273_v46  ;;  %841 = vmatpush.bf16.msra.mxu2 %v2306_v1 }
 0x228   :  { %v656_v18 = vpop.f32.mrf.mxu0  ;;  %v669_v28 = vpop.f32.mrf.mxu1 }
 0x229   :  { %v686_v56 = vadd.f32 %v656_v18, %v2375_v13  ;;  %v691_v4 = vadd.f32 %v669_v28, %v324_v24 }
 0x22b   :  { %v687_v14 = vmul.f32 0.5, %v686_v56  ;;  %v692_v19 = vmul.f32 0.5, %v691_v4 }
 0x22d   :  { %1769 = vtanh.f32 %v687_v14 }
 0x22e   :  { %1771 = vtanh.f32 %v692_v19  ;;  %v326_v19 = vadd.f32 %v2424_v33, %v2383_v39  ;;  %v355_v33 = vadd.f32 %v2426_v37, %v2389_v54  ;;  %v358_v37 = vadd.f32 %v2430_v41, %v2389_v54 }
 0x22f   :  { %v682_v21 = vpop.f32.mrf.mxu2 }
 0x230   :  { %v658_v26 = vpop.f32.mrf.mxu0  ;;  %v671_v8 = vpop.f32.mrf.mxu1  ;;  %v696_v0 = vadd.f32 %v2385_v43, %v682_v21 }
 0x233   :  { %v1770_v58 = vpop.eup %1769 }
 0x234   :  { %v689_v59 = vadd.f32 1.0, %v1770_v58  ;;  %v1772_v27 = vpop.eup %1771 }
 0x235   :  { %v694_v13 = vadd.f32 1.0, %v1772_v27 }
 0x236   :  { %v690_v62 = vmul.f32 0.5, %v689_v59 }
 0x237   :  { %v684_v2 = vpop.f32.mrf.mxu2  ;;  %v695_v11 = vmul.f32 0.5, %v694_v13 }
 0x238   :  { %v697_v3 = vmul.f32 %v696_v0, %v690_v62 }
 0x239   :  { %v700_v24 = vsub.f32 1.0, %v695_v11  ;;  %v702_v28 = vmul.f32 %v695_v11, %v645_v9 }
 0x23a   :  { %v698_v7 = vadd.f32 %v697_v3, %v353_v29 }
 0x23c   :  { %1773 = vtanh.f32 %v698_v7 }
 0x242   :  { %v1774_v18 = vpop.eup %1773 }
 0x243   :  { %v701_v56 = vmul.f32 %v1774_v18, %v700_v24 }
 0x245   :  { %v703_v4 = vadd.f32 %v702_v28, %v701_v56 }
 0x247   :  { %v704_v14 = vpack.c.bf16 %v703_v4, %v703_v4 }
 0x249   :  { %713 = vmatmul.bf16.vlgmr.msra.gmra.mxu3 %v704_v14  ;;  %726 = vmatmul.bf16.vlgmr.msrb.gmra.mxu0 %v704_v14 }
 0x24a   :  { %739 = vmatmul.bf16.vlgmr.msrb.gmra.mxu1 %v704_v14  ;;  %847 = vmatpush.bf16.msra.mxu3 %v2210_v25 }
 0x24b   :  { %879 = vmatpush.bf16.msrb.mxu0 %v2203_v12  ;;  %892 = vmatpush.bf16.msrb.mxu1 %v2239_v5 }
 0x24e   :  { %848 = vmatpush.bf16.msra.mxu3 %v2215_v34 }
 0x24f   :  { %880 = vmatpush.bf16.msrb.mxu0 %v2208_v23  ;;  %893 = vmatpush.bf16.msrb.mxu1 %v2250_v22 }
 0x252   :  { %849 = vmatpush.bf16.msra.mxu3 %v2227_v45 }
 0x253   :  { %881 = vmatpush.bf16.msrb.mxu0 %v2218_v35  ;;  %894 = vmatpush.bf16.msrb.mxu1 %v2265_v40 }
 0x256   :  { %850 = vmatpush.bf16.msra.mxu3 %v2234_v60 }
 0x257   :  { %882 = vmatpush.bf16.msrb.mxu0 %v2230_v49  ;;  %895 = vmatpush.bf16.msrb.mxu1 %v2277_v50 }
 0x25a   :  { %851 = vmatpush.bf16.msra.mxu3 %v2244_v15 }
 0x25b   :  { %883 = vmatpush.bf16.msrb.mxu0 %v2237_v63  ;;  %896 = vmatpush.bf16.msrb.mxu1 %v2286_v36 }
 0x25e   :  { %852 = vmatpush.bf16.msra.mxu3 %v2257_v31 }
 0x25f   :  { %884 = vmatpush.bf16.msrb.mxu0 %v2248_v16  ;;  %897 = vmatpush.bf16.msrb.mxu1 %v2293_v57 }
 0x262   :  { %853 = vmatpush.bf16.msra.mxu3 %v2268_v44 }
 0x263   :  { %885 = vmatpush.bf16.msrb.mxu0 %v2261_v32  ;;  %898 = vmatpush.bf16.msrb.mxu1 %v2299_v61 }
 0x266   :  { %854 = vmatpush.bf16.msra.mxu3 %v2280_v53 }
 0x267   :  { %886 = vmatpush.bf16.msrb.mxu0 %v2273_v46  ;;  %899 = vmatpush.bf16.msrb.mxu1 %v2306_v1 }
 0x2c6   :  { %v727_v30 = vpop.f32.mrf.mxu0 }
 0x2c7   :  { %v740_v9 = vpop.f32.mrf.mxu1  ;;  %v749_v21 = vadd.f32 %v727_v30, %v326_v19 }
 0x2c8   :  { %v754_v13 = vadd.f32 %v2385_v43, %v740_v9 }
 0x2c9   :  { %v750_v62 = vmul.f32 0.5, %v749_v21 }
 0x2cc   :  { %v714_v26 = vpop.f32.mrf.mxu3 }
 0x2cd   :  { %v744_v8 = vadd.f32 %v714_v26, %v2379_v20 }
 0x2ce   :  { %v729_v58 = vpop.f32.mrf.mxu0 }
 0x2cf   :  { %v745_v59 = vmul.f32 0.5, %v744_v8  ;;  %v742_v27 = vpop.f32.mrf.mxu1 }
 0x2d1   :  { %1775 = vtanh.f32 %v745_v59 }
 0x2d2   :  { %1777 = vtanh.f32 %v750_v62 }
 0x2d4   :  { %v716_v0 = vpop.f32.mrf.mxu3 }
 0x2d7   :  { %v1776_v2 = vpop.eup %1775 }
 0x2d8   :  { %v747_v29 = vadd.f32 1.0, %v1776_v2  ;;  %v1778_v3 = vpop.eup %1777 }
 0x2d9   :  { %v752_v24 = vadd.f32 1.0, %v1778_v3 }
 0x2da   :  { %v748_v7 = vmul.f32 0.5, %v747_v29 }
 0x2db   :  { %v753_v20 = vmul.f32 0.5, %v752_v24 }
 0x2dc   :  { %v755_v11 = vmul.f32 %v754_v13, %v748_v7 }
 0x2dd   :  { %v758_v28 = vsub.f32 1.0, %v753_v20  ;;  %v760_v14 = vmul.f32 %v753_v20, %v703_v4 }
 0x2de   :  { %v756_v18 = vadd.f32 %v755_v11, %v355_v33 }
 0x2e0   :  { %1779 = vtanh.f32 %v756_v18 }
 0x2e6   :  { %v1780_v56 = vpop.eup %1779 }
 0x2e7   :  { %v759_v30 = vmul.f32 %v1780_v56, %v758_v28 }
 0x2e9   :  { %v761_v19 = vadd.f32 %v760_v14, %v759_v30 }
 0x2eb   :  { %v762_v21 = vpack.c.bf16 %v761_v19, %v761_v19 }
 0x2ed   :  { %771 = vmatmul.bf16.vlgmr.msrb.gmra.mxu2 %v762_v21  ;;  %784 = vmatmul.bf16.vlgmr.msrb.gmra.mxu3 %v762_v21 }
 0x2ee   :  { %797 = vmatmul.bf16.vlgmr.msra.gmra.mxu0 %v762_v21  ;;  %905 = vmatpush.bf16.msrb.mxu2 %v2210_v25  ;;  %v1565_v21 = vld [vmem:[#allocation11 + $0x18] sm:$0xf] }
 0x2ef   :  { %937 = vmatpush.bf16.msrb.mxu3 %v2203_v12  ;;  %950 = vmatpush.bf16.msra.mxu0 %v2239_v5 }
 0x2f2   :  { %906 = vmatpush.bf16.msrb.mxu2 %v2215_v34 }
 0x2f3   :  { %938 = vmatpush.bf16.msrb.mxu3 %v2208_v23  ;;  %951 = vmatpush.bf16.msra.mxu0 %v2250_v22  ;;  %v329_v23 = vadd.f32 %v2428_v38, %v2383_v39 }
 0x2f6   :  { %907 = vmatpush.bf16.msrb.mxu2 %v2227_v45 }
 0x2f7   :  { %939 = vmatpush.bf16.msrb.mxu3 %v2218_v35  ;;  %952 = vmatpush.bf16.msra.mxu0 %v2265_v40 }
 0x2fa   :  { %908 = vmatpush.bf16.msrb.mxu2 %v2234_v60 }
 0x2fb   :  { %940 = vmatpush.bf16.msrb.mxu3 %v2230_v49  ;;  %953 = vmatpush.bf16.msra.mxu0 %v2277_v50 }
 0x2fe   :  { %909 = vmatpush.bf16.msrb.mxu2 %v2244_v15 }
 0x2ff   :  { %941 = vmatpush.bf16.msrb.mxu3 %v2237_v63  ;;  %954 = vmatpush.bf16.msra.mxu0 %v2286_v36 }
 0x302   :  { %910 = vmatpush.bf16.msrb.mxu2 %v2257_v31 }
 0x303   :  { %942 = vmatpush.bf16.msrb.mxu3 %v2248_v16  ;;  %955 = vmatpush.bf16.msra.mxu0 %v2293_v57 }
 0x306   :  { %911 = vmatpush.bf16.msrb.mxu2 %v2268_v44 }
 0x307   :  { %943 = vmatpush.bf16.msrb.mxu3 %v2261_v32  ;;  %956 = vmatpush.bf16.msra.mxu0 %v2299_v61 }
 0x30a   :  { %912 = vmatpush.bf16.msrb.mxu2 %v2280_v53 }
 0x30b   :  { %944 = vmatpush.bf16.msrb.mxu3 %v2273_v46  ;;  %957 = vmatpush.bf16.msra.mxu0 %v2306_v1 }
 0x36b   :  { %v798_v12 = vpop.f32.mrf.mxu0 }
 0x36c   :  { %v812_v61 = vadd.f32 %v2385_v43, %v798_v12  ;;  %v1708_v12 = vld [vmem:[#allocation11 + $0x20] sm:$0xf0] }
 0x370   :  { %v772_v35 = vpop.f32.mrf.mxu2  ;;  %v785_v49 = vpop.f32.mrf.mxu3 }
 0x371   :  { %v802_v63 = vadd.f32 %v772_v35, %v2369_v6  ;;  %v807_v5 = vadd.f32 %v785_v49, %v329_v23  ;;  %v1566_v23 = vor.u32 %v1708_v12, %v1565_v21  ;;  %v1705_v35 = vld [vmem:[#allocation11 + $0x8] sm:$0xf0]  ;;  %v2618_v21 = vld [vmem:[#allocation24_spill] sm:$0xff] }
 0x373   :  { %v803_v16 = vmul.f32 0.5, %v802_v63  ;;  %v800_v22 = vpop.f32.mrf.mxu0  ;;  %v808_v32 = vmul.f32 0.5, %v807_v5  ;;  %v1707_v63 = vld [vmem:[#allocation11 + $0x1c] sm:$0xf]  ;;  %v1567_v5 = vld [vmem:[#allocation11 + $0x24] sm:$0xf0] }
 0x374   :  { %v334_v22 = vadd.f32 %v2436_v51, %v2383_v39 }
 0x375   :  { %1781 = vtanh.f32 %v803_v16  ;;  %v1570_v16 = vor.u32 %v1707_v63, %v1567_v5 }
 0x376   :  { %1783 = vtanh.f32 %v808_v32  ;;  %v1704_v32 = vld [vmem:[#allocation11 + $0x4] sm:$0xf] }
 0x378   :  { %v774_v40 = vpop.f32.mrf.mxu2  ;;  %v787_v50 = vpop.f32.mrf.mxu3 }
 0x379   :  { %v1555_v40 = vld [vmem:[#allocation11 + $0xc] sm:$0xf0] }
 0x37b   :  { %v1782_v36 = vpop.eup %1781 }
 0x37c   :  { %v805_v46 = vadd.f32 1.0, %v1782_v36  ;;  %v1784_v57 = vpop.eup %1783 }
 0x37d   :  { %v810_v4 = vadd.f32 1.0, %v1784_v57 }
 0x37e   :  { %v806_v1 = vmul.f32 0.5, %v805_v46  ;;  %v1558_v46 = vor.u32 %v1704_v32, %v1555_v40 }
 0x37f   :  { %v811_v9 = vmul.f32 0.5, %v810_v4 }
 0x380   :  { %v813_v38 = vmul.f32 %v812_v61, %v806_v1  ;;  %v1573_v1 = vld [vmem:[#allocation11 + $0x20] sm:$0xf] }
 0x381   :  { %v816_v26 = vsub.f32 1.0, %v811_v9  ;;  %v818_v59 = vmul.f32 %v811_v9, %v761_v19  ;;  %v1706_v9 = vld [vmem:[#allocation11 + $0x10] sm:$0xf0] }
 0x382   :  { %v814_v6 = vadd.f32 %v813_v38, %v358_v37  ;;  %v1709_v37 = vld [vmem:[#allocation11 + $0x28] sm:$0xf0]  ;;  %v1561_v38 = vld [vmem:[#allocation11 + $0x8] sm:$0xf] }
 0x383   :  { %v1562_v51 = vor.u32 %v1706_v9, %v1561_v38 }
 0x384   :  { %1785 = vtanh.f32 %v814_v6  ;;  %v1574_v6 = vor.u32 %v1709_v37, %v1573_v1  ;;  %v2619_v1 = vld [vmem:[#allocation25_spill] sm:$0xff] }
 0x385   :  { %v365_v37 = vadd.f32 %v2619_v1, %v2389_v54 }
 0x38a   :  { %v1786_v8 = vpop.eup %1785 }
 0x38b   :  { %v817_v58 = vmul.f32 %v1786_v8, %v816_v26 }
 0x38d   :  { %v819_v27 = vadd.f32 %v818_v59, %v817_v58 }
 0x38f   :  { %v820_v62 = vpack.c.bf16 %v819_v27, %v819_v27 }
 0x391   :  { %829 = vmatmul.bf16.vlgmr.msra.gmra.mxu1 %v820_v62  ;;  %842 = vmatmul.bf16.vlgmr.msra.gmra.mxu2 %v820_v62 }
 0x392   :  { %855 = vmatmul.bf16.vlgmr.msra.gmra.mxu3 %v820_v62  ;;  %963 = vmatpush.bf16.msra.mxu1 %v2210_v25  ;;  %v331_v25 = vadd.f32 %v2432_v47, %v2383_v39 }
 0x393   :  { %1051 = vmatpush.bf16.msra.mxu2 %v1566_v23  ;;  %1077 = vmatpush.bf16.msra.mxu3 %v1574_v6 }
 0x396   :  { %964 = vmatpush.bf16.msra.mxu1 %v2215_v34 }
 0x397   :  { %1078 = vmatpush.bf16.msra.mxu3 %v1562_v51 }
 0x39a   :  { %965 = vmatpush.bf16.msra.mxu1 %v2227_v45 }
 0x39e   :  { %966 = vmatpush.bf16.msra.mxu1 %v2234_v60 }
 0x3a2   :  { %967 = vmatpush.bf16.msra.mxu1 %v2244_v15 }
 0x3a6   :  { %968 = vmatpush.bf16.msra.mxu1 %v2257_v31 }
 0x3aa   :  { %969 = vmatpush.bf16.msra.mxu1 %v2268_v44 }
 0x3ae   :  { %970 = vmatpush.bf16.msra.mxu1 %v2280_v53 }
 0x40e   :  { %v830_v41 = vpop.f32.mrf.mxu1 }
 0x40f   :  { %v860_v0 = vadd.f32 %v830_v41, %v2373_v10  ;;  %v360_v10 = vadd.f32 %v2434_v48, %v2389_v54  ;;  %v1553_v48 = vld [vmem:[#allocation11] sm:$0xf] }
 0x410   :  { %v1554_v49 = vor.u32 %v1705_v35, %v1553_v48 }
 0x411   :  { %v861_v2 = vmul.f32 0.5, %v860_v0 }
 0x412   :  { %1052 = vmatpush.bf16.msra.mxu2 %v1554_v49 }
 0x413   :  { %1787 = vtanh.f32 %v861_v2 }
 0x414   :  { %v843_v34 = vpop.f32.mrf.mxu2 }
 0x415   :  { %v865_v45 = vadd.f32 %v843_v34, %v331_v25  ;;  %v856_v29 = vpop.f32.mrf.mxu3  ;;  %v363_v25 = vadd.f32 %v2438_v52, %v2389_v54 }
 0x416   :  { %v832_v60 = vpop.f32.mrf.mxu1  ;;  %v870_v44 = vadd.f32 %v2385_v43, %v856_v29 }
 0x417   :  { %v866_v3 = vmul.f32 0.5, %v865_v45 }
 0x419   :  { %v1788_v15 = vpop.eup %1787  ;;  %1789 = vtanh.f32 %v866_v3 }
 0x41a   :  { %v863_v31 = vadd.f32 1.0, %v1788_v15 }
 0x41c   :  { %v864_v13 = vmul.f32 0.5, %v863_v31  ;;  %v845_v53 = vpop.f32.mrf.mxu2 }
 0x41d   :  { %v858_v7 = vpop.f32.mrf.mxu3 }
 0x41e   :  { %v871_v33 = vmul.f32 %v870_v44, %v864_v13 }
 0x41f   :  { %v1790_v11 = vpop.eup %1789 }
 0x420   :  { %v868_v47 = vadd.f32 1.0, %v1790_v11  ;;  %v872_v24 = vadd.f32 %v871_v33, %v360_v10  ;;  %v1002_v11 = vld [vmem:[%s2607_s6] sm:$0x7] }
 0x422   :  { %1791 = vtanh.f32 %v872_v24  ;;  %v869_v18 = vmul.f32 0.5, %v868_v47  ;;  %v1004_v47 = vperm.slane %v1002_v11, 0 }
 0x424   :  { %v874_v20 = vsub.f32 1.0, %v869_v18  ;;  %v876_v56 = vmul.f32 %v869_v18, %v819_v27 }
 0x428   :  { %v1792_v28 = vpop.eup %1791 }
 0x429   :  { %v875_v14 = vmul.f32 %v1792_v28, %v874_v20  ;;  %v1005_v28 = vperm.slane %v1002_v11, 1 }
 0x42b   :  { %v877_v30 = vadd.f32 %v876_v56, %v875_v14  ;;  %v336_v14 = vadd.f32 %v2440_v55, %v2383_v39 }
 0x42d   :  { %v878_v19 = vpack.c.bf16 %v877_v30, %v877_v30 }
 0x42f   :  { %887 = vmatmul.bf16.vlgmr.msrb.gmra.mxu0 %v878_v19  ;;  %900 = vmatmul.bf16.vlgmr.msrb.gmra.mxu1 %v878_v19 }
 0x430   :  { %913 = vmatmul.bf16.vlgmr.msrb.gmra.mxu2 %v878_v19 }
 0x431   :  { %1064 = vmatpush.bf16.msrb.mxu2 %v1570_v16 }
 0x435   :  { %1065 = vmatpush.bf16.msrb.mxu2 %v1558_v46 }
 0x440   :  { %1575 = vmatmul.msk.bf16.vlgmr.msra.gmra.mxu2 %vm267_vm0, %v2222_v42 }
 0x450   :  { %1576 = vmatmul.msk.bf16.vlgmr.msrb.gmra.mxu2 %vm267_vm0, %v2222_v42 }
 0x4ac   :  { %v888_v50 = vpop.f32.mrf.mxu0  ;;  %v901_v36 = vpop.f32.mrf.mxu1 }
 0x4ad   :  { %v918_v57 = vadd.f32 %v888_v50, %v2377_v17  ;;  %v923_v61 = vadd.f32 %v901_v36, %v334_v22  ;;  %v1006_v50 = vperm.slane %v1002_v11, 2  ;;  %v1754_v36 = vld [vmem:[#allocation13] ss:$0 sm:$0xff] }
 0x4ae   :  { %v1721_v11 = vld [vmem:[#allocation14 + $0x58] sm:$0xff] }
 0x4af   :  { %v919_v4 = vmul.f32 0.5, %v918_v57  ;;  %v924_v26 = vmul.f32 0.5, %v923_v61 }
 0x4b1   :  { %1793 = vtanh.f32 %v919_v4 }
 0x4b2   :  { %1795 = vtanh.f32 %v924_v26 }
 0x4b3   :  { %v914_v8 = vpop.f32.mrf.mxu2 }
 0x4b4   :  { %v890_v58 = vpop.f32.mrf.mxu0  ;;  %v903_v59 = vpop.f32.mrf.mxu1  ;;  %v928_v0 = vadd.f32 %v2385_v43, %v914_v8 }
 0x4b7   :  { %v1794_v17 = vpop.eup %1793 }
 0x4b8   :  { %v921_v27 = vadd.f32 1.0, %v1794_v17  ;;  %v1796_v62 = vpop.eup %1795 }
 0x4b9   :  { %v926_v45 = vadd.f32 1.0, %v1796_v62 }
 0x4ba   :  { %v922_v41 = vmul.f32 0.5, %v921_v27 }
 0x4bb   :  { %v916_v2 = vpop.f32.mrf.mxu2  ;;  %v927_v60 = vmul.f32 0.5, %v926_v45 }
 0x4bc   :  { %v929_v34 = vmul.f32 %v928_v0, %v922_v41 }
 0x4bd   :  { %v932_v3 = vsub.f32 1.0, %v927_v60  ;;  %v934_v31 = vmul.f32 %v927_v60, %v877_v30 }
 0x4be   :  { %v930_v29 = vadd.f32 %v929_v34, %v363_v25 }
 0x4c0   :  { %1797 = vtanh.f32 %v930_v29 }
 0x4c3   :  { %v1054_v7 = vpop.f32.mrf.mxu2 }
 0x4c4   :  { %v1055_v24 = vadd.f32 %v1054_v7, %v1004_v47  ;;  %v1723_v7 = vld [vmem:[#allocation14 + $0x68] sm:$0xff]  ;;  %v1712_v47 = vld [vmem:[#allocation14 + $0x10] sm:$0xff] }
 0x4c6   :  { %v1798_v15 = vpop.eup %1797  ;;  %v1084_v56 = vmul.f32 0.5, %v1055_v24  ;;  %v1720_v24 = vld [vmem:[#allocation14 + $0x50] sm:$0xff] }
 0x4c7   :  { %v933_v13 = vmul.f32 %v1798_v15, %v932_v3  ;;  %v1717_v15 = vld [vmem:[#allocation14 + $0x38] sm:$0xff] }
 0x4c8   :  { %1799 = vtanh.f32 %v1084_v56  ;;  %1279 = vmatpush.bf16.msrb.mxu0 %v1717_v15  ;;  %v1756_v15 = vld [vmem:[%s2614_s13] ss:$0 sm:$0xff] }
 0x4c9   :  { %v935_v44 = vadd.f32 %v934_v31, %v933_v13  ;;  %v1725_v31 = vld [vmem:[#allocation14 + $0x78] sm:$0xff]  ;;  %v1716_v13 = vld [vmem:[#allocation14 + $0x30] sm:$0xff] }
 0x4ca   :  { %1292 = vmatpush.bf16.msrb.mxu1 %v1725_v31 }
 0x4cb   :  { %v936_v53 = vpack.c.bf16 %v935_v44, %v935_v44  ;;  %v1056_v10 = vpop.f32.mrf.mxu2 }
 0x4cc   :  { %1280 = vmatpush.bf16.msrb.mxu0 %v1716_v13  ;;  %v1714_v10 = vld [vmem:[#allocation14 + $0x20] sm:$0xff] }
 0x4cd   :  { %945 = vmatmul.bf16.vlgmr.msrb.gmra.mxu3 %v936_v53  ;;  %958 = vmatmul.bf16.vlgmr.msra.gmra.mxu0 %v936_v53 }
 0x4ce   :  { %971 = vmatmul.bf16.vlgmr.msra.gmra.mxu1 %v936_v53  ;;  %v1800_v5 = vpop.eup %1799  ;;  %v1715_v53 = vld [vmem:[#allocation14 + $0x28] sm:$0xff] }
 0x4cf   :  { %v1086_v22 = vadd.f32 1.0, %v1800_v5  ;;  %v1730_v5 = vld [vmem:[#allocation16 + $0x20] sm:$0xff] }
 0x4d0   :  { %1281 = vmatpush.bf16.msrb.mxu0 %v1715_v53 }
 0x4d1   :  { %v1087_v55 = vmul.f32 0.5, %v1086_v22 }
 0x4d3   :  { %v1067_v52 = vpop.f32.mrf.mxu2  ;;  %v1096_v51 = vmul.f32 %v1754_v36, %v1087_v55  ;;  %v1728_v55 = vld [vmem:[#allocation16 + $0x10] sm:$0xff]  ;;  %v1129_v36 = vld [vmem:[%s2609_s8] sm:$0x3] }
 0x4d4   :  { %v1068_v30 = vadd.f32 %v1067_v52, %v1005_v28  ;;  %v1722_v52 = vld [vmem:[#allocation14 + $0x60] sm:$0xff]  ;;  %1282 = vmatpush.bf16.msrb.mxu0 %v1714_v10  ;;  %v1719_v28 = vld [vmem:[#allocation14 + $0x48] sm:$0xff] }
 0x4d6   :  { %v1088_v49 = vmul.f32 0.5, %v1068_v30  ;;  %v1718_v30 = vld [vmem:[#allocation14 + $0x40] sm:$0xff] }
 0x4db   :  { %v1069_v33 = vpop.f32.mrf.mxu2 }
 0x4dc   :  { %v1713_v33 = vld [vmem:[#allocation14 + $0x18] sm:$0xff] }
 0x4dd   :  { %1577 = vmatmul.msk.bf16.vlgmr.msra.gmra.mxu3 %vm267_vm0, %v2222_v42  ;;  %1283 = vmatpush.bf16.msrb.mxu0 %v1713_v33 }
 0x4e1   :  { %1284 = vmatpush.bf16.msrb.mxu0 %v1712_v47 }
 0x54a   :  { %v959_v18 = vpop.f32.mrf.mxu0 }
 0x54b   :  { %v972_v20 = vpop.f32.mrf.mxu1  ;;  %v981_v42 = vadd.f32 %v959_v18, %v336_v14  ;;  %v1710_v14 = vld [vmem:[#allocation14] sm:$0xff] }
 0x54c   :  { %v986_v57 = vadd.f32 %v2385_v43, %v972_v20  ;;  %v1711_v20 = vld [vmem:[#allocation14 + $0x8] sm:$0xff] }
 0x54d   :  { %v982_v63 = vmul.f32 0.5, %v981_v42  ;;  %1285 = vmatpush.bf16.msrb.mxu0 %v1711_v20 }
 0x550   :  { %v946_v19 = vpop.f32.mrf.mxu3 }
 0x551   :  { %v976_v12 = vadd.f32 %v946_v19, %v2618_v21  ;;  %1286 = vmatpush.bf16.msrb.mxu0 %v1710_v14 }
 0x552   :  { %v961_v23 = vpop.f32.mrf.mxu0 }
 0x553   :  { %v977_v48 = vmul.f32 0.5, %v976_v12  ;;  %v974_v35 = vpop.f32.mrf.mxu1  ;;  %v1733_v23 = vld [vmem:[#allocation16 + $0x38] sm:$0xff] }
 0x554   :  { %1375 = vmatpush.bf16.msra.mxu2 %v1733_v23  ;;  %v1732_v35 = vld [vmem:[#allocation16 + $0x30] sm:$0xff] }
 0x555   :  { %1801 = vtanh.f32 %v977_v48 }
 0x556   :  { %1803 = vtanh.f32 %v1088_v49 }
 0x557   :  { %1805 = vtanh.f32 %v982_v63  ;;  %v1731_v63 = vld [vmem:[#allocation16 + $0x28] sm:$0xff] }
 0x558   :  { %v948_v16 = vpop.f32.mrf.mxu3  ;;  %1376 = vmatpush.bf16.msra.mxu2 %v1732_v35 }
 0x55b   :  { %v1802_v32 = vpop.eup %1801 }
 0x55c   :  { %v979_v40 = vadd.f32 1.0, %v1802_v32  ;;  %v1804_v39 = vpop.eup %1803  ;;  %1377 = vmatpush.bf16.msra.mxu2 %v1731_v63  ;;  %v1729_v32 = vld [vmem:[#allocation16 + $0x18] sm:$0xff] }
 0x55d   :  { %v1806_v46 = vpop.eup %1805  ;;  %v1090_v4 = vadd.f32 1.0, %v1804_v39 }
 0x55e   :  { %v980_v61 = vmul.f32 0.5, %v979_v40  ;;  %v984_v9 = vadd.f32 1.0, %v1806_v46 }
 0x55f   :  { %v1091_v59 = vmul.f32 0.5, %v1090_v4 }
 0x560   :  { %v987_v38 = vmul.f32 %v986_v57, %v980_v61  ;;  %v1080_v6 = vpop.f32.mrf.mxu3  ;;  %v985_v17 = vmul.f32 0.5, %v984_v9  ;;  %1378 = vmatpush.bf16.msra.mxu2 %v1730_v5  ;;  %v1137_v57 = vld [vmem:[%s2610_s9] sm:$0x3] }
 0x561   :  { %v1081_v26 = vadd.f32 %v1080_v6, %v1006_v50  ;;  %v1099_v27 = vsub.f32 1.0, %v1091_v59 }
 0x562   :  { %v988_v8 = vadd.f32 %v987_v38, %v365_v37  ;;  %v990_v41 = vsub.f32 1.0, %v985_v17  ;;  %v992_v2 = vmul.f32 %v985_v17, %v935_v44  ;;  %v1724_v44 = vld [vmem:[#allocation14 + $0x70] sm:$0xff]  ;;  %v1131_v37 = vperm.slane %v1129_v36, 0 }
 0x563   :  { %v1097_v58 = vadd.f32 %v1096_v51, %v1081_v26  ;;  %1293 = vmatpush.bf16.msrb.mxu1 %v1724_v44  ;;  %v1132_v38 = vperm.slane %v1129_v36, 1  ;;  %v1139_v26 = vperm.slane %v1137_v57, 0  ;;  %v1140_v51 = vperm.slane %v1137_v57, 1 }
 0x564   :  { %1807 = vtanh.f32 %v988_v8  ;;  %1379 = vmatpush.bf16.msra.mxu2 %v1729_v32 }
 0x565   :  { %1809 = vtanh.f32 %v1097_v58 }
 0x567   :  { %1294 = vmatpush.bf16.msrb.mxu1 %v1723_v7 }
 0x568   :  { %v1082_v62 = vpop.f32.mrf.mxu3  ;;  %1380 = vmatpush.bf16.msra.mxu2 %v1728_v55 }
 0x56a   :  { %v1808_v43 = vpop.eup %1807 }
 0x56b   :  { %v1810_v0 = vpop.eup %1809  ;;  %v991_v25 = vmul.f32 %v1808_v43, %v990_v41  ;;  %1295 = vmatpush.bf16.msrb.mxu1 %v1722_v52  ;;  %v1727_v41 = vld [vmem:[#allocation16 + $0x8] sm:$0xff]  ;;  %v1726_v43 = vld [vmem:[#allocation16] sm:$0xff] }
 0x56c   :  { %v2574_v54 = vmul.f32 %v1810_v0, %v1099_v27  ;;  %1381 = vmatpush.bf16.msra.mxu2 %v1727_v41  ;;  %v1755_v0 = vld [vmem:[%s2612_s11] ss:$0 sm:$0xff]  ;;  %s2085_s11 = smov [#allocation17]  }
 0x56d   :  { %v2576_v34 = vadd.f32 %v992_v2, %v991_v25  ;;  %s1403_s27 = sshll.u32 %s2085_s11, 4  ;;  %s1404_s27 = int_to_ptr.vmem [resolvable:$true] %s1403_s27 }
 0x56e   :  { %v1106_v60 = vmul.f32 %v2574_v54, %v2574_v54 }
 0x56f   :  { %v1101_v45 = vadd.f32 %v2574_v54, %v2576_v34  ;;  %v1105_v29 = vmul.f32 %v2576_v34, %v2576_v34  ;;  %1296 = vmatpush.bf16.msrb.mxu1 %v1721_v11 }
 0x570   :  { %1382 = vmatpush.bf16.msra.mxu2 %v1726_v43 }
 0x571   :  { %1102 = vadd.xlane.f32.xlu0 %v1101_v45  ;;  %v1107_v3 = vadd.f32 %v1106_v60, %v1105_v29 }
 0x573   :  { %1297 = vmatpush.bf16.msrb.mxu1 %v1720_v24 }
 0x577   :  { %1298 = vmatpush.bf16.msrb.mxu1 %v1719_v28 }
 0x579   :  { %1108 = vadd.xlane.f32.xlu0 %v1107_v3 }
 0x57b   :  { %1299 = vmatpush.bf16.msrb.mxu1 %v1718_v30 }
 0x5e4   :  { %v1103_v18 = vpop.xlane.xlu0 %1102 }
 0x5e5   :  { %v1104_v56 = vmul.f32 0.005, %v1103_v18 }
 0x5e7   :  { %v1111_v19 = vmul.f32 %v1104_v56, %v1104_v56  ;;  %v1114_v61 = vsub.f32 %v2576_v34, %v1104_v56  ;;  %v1115_v1 = vsub.f32 %v2574_v54, %v1104_v56 }
 0x5ec   :  { %v1109_v42 = vpop.xlane.xlu0 %1108 }
 0x5ed   :  { %v1110_v21 = vmul.f32 0.005, %v1109_v42 }
 0x5ef   :  { %v1112_v12 = vsub.f32 %v1110_v21, %v1111_v19 }
 0x5f1   :  { %v1113_v48 = vmax.f32 %v1112_v12, 0.0 }
 0x5f3   :  { %v1116_v49 = vadd.f32 1e-05, %v1113_v48 }
 0x5f5   :  { %1811 = vrsqrt.f32 %v1116_v49  ;;  %vm1123_vm2 = vweird.f32 %v1116_v49 }
 0x5fb   :  { %v1812_v16 = vpop.eup %1811 }
 0x5fc   :  { %v1118_v22 = vmul.f32 %v1812_v16, %v1116_v49  ;;  %vm1124_vm1 = vweird.f32 %v1812_v16 }
 0x5fd   :  { %vm1125_vm3 = vmor %vm1123_vm2, %vm1124_vm1 }
 0x5fe   :  { %v1119_v40 = vmul.f32 %v1812_v16, %v1118_v22 }
 0x600   :  { %v1120_v39 = vmul.f32 0.5, %v1119_v40 }
 0x602   :  { %v1121_v50 = vsub.f32 1.5, %v1120_v39 }
 0x604   :  { %v1122_v46 = vmul.f32 %v1812_v16, %v1121_v50 }
 0x606   :  { %v1126_v4 = vsel %vm1125_vm3, %v1812_v16, %v1122_v46 }
 0x607   :  { %v1127_v6 = vmul.f32 %v1126_v4, %v1114_v61  ;;  %v1128_v9 = vmul.f32 %v1126_v4, %v1115_v1 }
 0x609   :  { %v1135_v8 = vmul.f32 %v1131_v37, %v1127_v6  ;;  %v1136_v58 = vmul.f32 %v1132_v38, %v1128_v9 }
 0x60b   :  { %v1143_v59 = vadd.f32 %v1139_v26, %v1135_v8  ;;  %v1144_v17 = vadd.f32 %v1140_v51, %v1136_v58 }
 0x60d   :  { %v1145_v27 = vpack.c.bf16 %v1143_v59, %v1143_v59  ;;  %v1146_v62 = vpack.c.bf16 %v1144_v17, %v1144_v17 }
 0x60f   :  { %1287 = vmatmul.bf16.vlgmr.msrb.gmra.mxu0 %v1145_v27  ;;  %1300 = vmatmul.bf16.vlgmr.msrb.gmra.mxu1 %v1146_v62 }
 0x68c   :  { %v1288_v2 = vpop.f32.mrf.mxu0  ;;  %v1301_v25 = vpop.f32.mrf.mxu1 }
 0x68d   :  { %v1289_v54 = vadd.f32 %v1755_v0, %v1288_v2 }
 0x68f   :  { %v1302_v34 = vadd.f32 %v1301_v25, %v1289_v54 }
 0x691   :  { %v1305_v45 = vmax.f32 %v1302_v34, 0.0 }
 0x693   :  { %v1306_v29 = vpack.c.bf16 %v1305_v45, %v1305_v45 }
 0x694   :  { %v1290_v60 = vpop.f32.mrf.mxu0  ;;  %v1303_v3 = vpop.f32.mrf.mxu1 }
 0x695   :  { %1383 = vmatmul.bf16.vlgmr.msra.gmra.mxu2 %v1306_v29 }
 0x718   :  { %v1384_v31 = vpop.f32.mrf.mxu2 }
 0x719   :  { %v1385_v13 = vadd.f32 %v1756_v15, %v1384_v31 }
 0x71b   :  { %1388 = vmax.xlane.f32.xlu1 %v1385_v13 }
 0x720   :  { %v1386_v44 = vpop.f32.mrf.mxu2 }
 0x78e   :  { %v1389_v53 = vpop.xlane.xlu1 %1388 }
 0x78f   :  { %v1390_v7 = vsub.f32 %v1385_v13, %v1389_v53 }
 0x791   :  { %v1391_v10 = vmul.f32 1.442695, %v1390_v7 }
 0x793   :  { %1813 = vpow2.f32 %v1391_v10 }
 0x799   :  { %v1814_v52 = vpop.eup %1813 }
 0x79a   :  { %1393 = vadd.xlane.f32.xlu1 %v1814_v52 }
 0x80d   :  { %v1394_v33 = vpop.xlane.xlu1 %1393 }
 0x80e   :  { %1815 = vrcp.f32 %v1394_v33 }
 0x814   :  { %v1816_v11 = vpop.eup %1815 }
 0x815   :  { %v1396_v47 = vmul.f32 %v1816_v11, %v1814_v52 }
 0x817   :  { %1397 = vst [vmem:[#allocation17] sm:$0xff] %v1396_v47 }
 0x818   :  { %1408 = dma.vmem_to_hbm [thread:$0]  %s1404_s27, 128, %s1406_s30, [#allocation4]  }
 0x819   :  { %2067 = dma.done.wait [#allocation4], 128  }
 0x81a   :  { %2068 = vsyncadd [#allocation4], 4294967168 }
 0x81b   :  { %1413 = vsyncpa [#allocation3], 1 }
 0x81c   :  { %1414 = vsyncpa [#allocation6], 1 }
 0x81d   :  { %1415 = vsyncpa [#allocation9], 1 }
 0x81e   :  { %1416 = vsyncpa [#allocation12], 1 }
 0x81f   :  { %1417 = vsyncpa [#allocation15], 1 }
 0x820   :  { %1418 = vsyncpa [#allocation4], 1 }

</bundles_post_ra>
